<compile_context>
chip_gen: v6e
topology: v6e:2x2x1
jax: 0.10.0
libtpu: 0.0.40
codegen_flags: <defaults>
</compile_context>

<pallas_src>
import math
from functools import partial

import jax
import jax.numpy as jnp
from jax.experimental import pallas as pl
from jax.experimental.pallas import tpu as pltpu


def _layernorm(h, gamma, beta, eps=1e-5):
    mu = jnp.mean(h, axis=-1, keepdims=True)
    var = jnp.mean((h - mu) ** 2, axis=-1, keepdims=True)
    return (h - mu) * jax.lax.rsqrt(var + eps) * gamma + beta


def encoder_layer_kernel(
    x_ref,
    wq_ref, bq_ref, wk_ref, bk_ref, wv_ref, bv_ref, wo_ref, bo_ref,
    g1_ref, beta1_ref,
    w1_ref, bf1_ref, w2_ref, bf2_ref,
    g2_ref, beta2_ref,
    out_ref,
    *, num_heads: int,
):
    Bt, S, D = x_ref.shape
    Dh = D // num_heads
    scale = 1.0 / math.sqrt(Dh)
    bf16 = jnp.bfloat16
    f32 = jnp.float32

    x = x_ref[...]                          # (Bt, S, D) f32; residual path stays f32
    x2 = x.reshape(Bt * S, D)
    xb = x2.astype(bf16)

    # ---- Q/K/V projections: bf16 MXU operands, f32 accumulation ----
    q = jnp.dot(xb, wq_ref[...], preferred_element_type=f32) + bq_ref[...]
    k = jnp.dot(xb, wk_ref[...], preferred_element_type=f32) + bk_ref[...]
    v = jnp.dot(xb, wv_ref[...], preferred_element_type=f32) + bv_ref[...]
    q = q * scale                           # fold 1/sqrt(Dh) into q once

    qb = q.astype(bf16).reshape(Bt, S, D)
    kb = k.astype(bf16).reshape(Bt, S, D)
    vb = v.astype(bf16).reshape(Bt, S, D)

    # ---- multi-head attention: each head's output is folded directly into
    #      its slice of the Wo product (no lane-axis concat of heads) ----
    acc = jnp.zeros((Bt * S, D), f32)
    for h in range(num_heads):              # static unroll over heads
        sl = slice(h * Dh, (h + 1) * Dh)
        qh = qb[:, :, sl]                   # (Bt, S, Dh) bf16
        kh = kb[:, :, sl]
        vh = vb[:, :, sl]
        # batched over Bt, contraction over Dh — no explicit kh.T transpose
        s = jnp.einsum("bqd,bkd->bqk", qh, kh, preferred_element_type=f32)
        m = jnp.max(s, axis=-1, keepdims=True)           # softmax stays f32
        p = jnp.exp(s - m)
        denom = jnp.sum(p, axis=-1, keepdims=True)
        attn = p * pl.reciprocal(denom, approx=True)     # EUP, not VPU divide
        oh = jnp.einsum("bqk,bkd->bqd", attn.astype(bf16), vh,
                        preferred_element_type=f32)      # (Bt, S, Dh)
        acc = acc + jnp.dot(oh.astype(bf16).reshape(Bt * S, Dh),
                            wo_ref[sl, :], preferred_element_type=f32)
    mha_out = acc + bo_ref[...]

    # ---- residual + LayerNorm 1 (f32) ----
    n1 = _layernorm(mha_out + x2, g1_ref[...], beta1_ref[...])

    # ---- feed-forward network: bf16 matmuls, f32 accumulate/bias/ReLU ----
    hidden = jnp.dot(n1.astype(bf16), w1_ref[...],
                     preferred_element_type=f32) + bf1_ref[...]
    hidden = jnp.maximum(hidden, 0.0)
    ffn = jnp.dot(hidden.astype(bf16), w2_ref[...],
                  preferred_element_type=f32) + bf2_ref[...]

    # ---- residual + LayerNorm 2 (f32) ----
    out = _layernorm(ffn + n1, g2_ref[...], beta2_ref[...])
    out_ref[...] = out.reshape(Bt, S, D)


def encoder_layer(x, params, num_heads, *, batch_tile=2):
    B, S, D = x.shape
    d_ff = params["w1"].shape[1]
    assert B % batch_tile == 0, "batch must be divisible by batch_tile"
    assert D % num_heads == 0, "d_model must be divisible by num_heads"
    Bt = batch_tile
    bf16 = jnp.bfloat16

    full = lambda shape: pl.BlockSpec(shape, lambda b: (0,) * len(shape))
    # TODO(synk): single-buffer the constant weight specs (pipeline_mode=pl.Buffered(1))
    # once guaranteed available in the target JAX; bf16 weights already halve their VMEM.
    in_specs = [
        pl.BlockSpec((Bt, S, D), lambda b: (b, 0, 0)),   # x (activation tile)
        full((D, D)), full((1, D)),                      # Wq, bq
        full((D, D)), full((1, D)),                      # Wk, bk
        full((D, D)), full((1, D)),                      # Wv, bv
        full((D, D)), full((1, D)),                      # Wo, bo
        full((1, D)), full((1, D)),                      # gamma1, beta1
        full((D, d_ff)), full((1, d_ff)),                # W1, b1
        full((d_ff, D)), full((1, D)),                   # W2, b2
        full((1, D)), full((1, D)),                      # gamma2, beta2
    ]

    return pl.pallas_call(
        partial(encoder_layer_kernel, num_heads=num_heads),
        out_shape=jax.ShapeDtypeStruct((B, S, D), jnp.float32),
        grid_spec=pltpu.PrefetchScalarGridSpec(
            num_scalar_prefetch=0,
            grid=(B // Bt,),
            in_specs=in_specs,
            out_specs=pl.BlockSpec((Bt, S, D), lambda b: (b, 0, 0)),
        ),
        compiler_params=pltpu.CompilerParams(
            dimension_semantics=("parallel",),
            vmem_limit_bytes=32 * 1024 * 1024,
        ),
    )(
        x,
        params["wq"].astype(bf16), params["bq"],
        params["wk"].astype(bf16), params["bk"],
        params["wv"].astype(bf16), params["bv"],
        params["wo"].astype(bf16), params["bo"],
        params["g1"], params["beta1"],
        params["w1"].astype(bf16), params["b1"],
        params["w2"].astype(bf16), params["b2"],
        params["g2"], params["beta2"],
    )


def reference_encoder_layer(x, p, num_heads):
    """Pure-JAX f32 reference mirroring the PyTorch forward."""
    B, S, D = x.shape
    Dh = D // num_heads
    scale = 1.0 / math.sqrt(Dh)

    def ln(h, g, b):
        mu = jnp.mean(h, axis=-1, keepdims=True)
        var = jnp.mean((h - mu) ** 2, axis=-1, keepdims=True)
        return (h - mu) / jnp.sqrt(var + 1e-5) * g + b

    q = x @ p["wq"] + p["bq"]
    k = x @ p["wk"] + p["bk"]
    v = x @ p["wv"] + p["bv"]
    qh = q.reshape(B, S, num_heads, Dh).transpose(0, 2, 1, 3)
    kh = k.reshape(B, S, num_heads, Dh).transpose(0, 2, 1, 3)
    vh = v.reshape(B, S, num_heads, Dh).transpose(0, 2, 1, 3)
    scores = jnp.einsum("bhqd,bhkd->bhqk", qh, kh) * scale
    attn = jax.nn.softmax(scores, axis=-1)
    o = jnp.einsum("bhqk,bhkd->bhqd", attn, vh).transpose(0, 2, 1, 3).reshape(B, S, D)
    mha = o @ p["wo"] + p["bo"]
    n1 = ln(mha + x, p["g1"], p["beta1"])
    ff = jnp.maximum(n1 @ p["w1"] + p["b1"], 0.0) @ p["w2"] + p["b2"]
    return ln(ff + n1, p["g2"], p["beta2"])


def init_params(key, d_model, d_ff):
    keys = jax.random.split(key, 8)
    s = 1.0 / math.sqrt(d_model)
    return {
        "wq": jax.random.normal(keys[0], (d_model, d_model), jnp.float32) * s,
        "wk": jax.random.normal(keys[1], (d_model, d_model), jnp.float32) * s,
        "wv": jax.random.normal(keys[2], (d_model, d_model), jnp.float32) * s,
        "wo": jax.random.normal(keys[3], (d_model, d_model), jnp.float32) * s,
        "bq": jnp.zeros((1, d_model), jnp.float32),
        "bk": jnp.zeros((1, d_model), jnp.float32),
        "bv": jnp.zeros((1, d_model), jnp.float32),
        "bo": jnp.zeros((1, d_model), jnp.float32),
        "g1": jnp.ones((1, d_model), jnp.float32),
        "beta1": jnp.zeros((1, d_model), jnp.float32),
        "w1": jax.random.normal(keys[4], (d_model, d_ff), jnp.float32) * s,
        "b1": jax.random.normal(keys[5], (1, d_ff), jnp.float32) * 0.01,
        "w2": jax.random.normal(keys[6], (d_ff, d_model), jnp.float32) / math.sqrt(d_ff),
        "b2": jax.random.normal(keys[7], (1, d_model), jnp.float32) * 0.01,
        "g2": jnp.ones((1, d_model), jnp.float32),
        "beta2": jnp.zeros((1, d_model), jnp.float32),
    }


if __name__ == "__main__":
    # D is a multiple of 128 so activations / output stores are lane-dense.
    B, S, d_model, num_heads, d_ff = 4, 16, 128, 4, 256

    key = jax.random.PRNGKey(0)
    kx, kp = jax.random.split(key)
    x = jax.random.normal(kx, (B, S, d_model), jnp.float32)
    params = init_params(kp, d_model, d_ff)

    out = encoder_layer(x, params, num_heads, batch_tile=2)
    out = jax.block_until_ready(out)

    ref = reference_encoder_layer(x, params, num_heads)
    assert out.shape == (B, S, d_model)
    err = float(jnp.max(jnp.abs(out - ref)))
    # bf16 MXU operands + approx reciprocal loosen numerics vs the f32 reference.
    assert err < 1e-1, f"mismatch vs pure-JAX reference: max abs err {err}"

    print("KERNEL_OK")
</pallas_src>

<mosaic_0001>
module attributes {stable_mosaic.version = 11 : i64} {
  func.func @encoder_layer_kernel(%arg0: i32, %arg1: memref<2x16x128xf32, #tpu.memory_space<vmem>>, %arg2: memref<128x128xbf16, #tpu.memory_space<vmem>>, %arg3: memref<1x128xf32, #tpu.memory_space<vmem>>, %arg4: memref<128x128xbf16, #tpu.memory_space<vmem>>, %arg5: memref<1x128xf32, #tpu.memory_space<vmem>>, %arg6: memref<128x128xbf16, #tpu.memory_space<vmem>>, %arg7: memref<1x128xf32, #tpu.memory_space<vmem>>, %arg8: memref<128x128xbf16, #tpu.memory_space<vmem>>, %arg9: memref<1x128xf32, #tpu.memory_space<vmem>>, %arg10: memref<1x128xf32, #tpu.memory_space<vmem>>, %arg11: memref<1x128xf32, #tpu.memory_space<vmem>>, %arg12: memref<128x256xbf16, #tpu.memory_space<vmem>>, %arg13: memref<1x256xf32, #tpu.memory_space<vmem>>, %arg14: memref<256x128xbf16, #tpu.memory_space<vmem>>, %arg15: memref<1x128xf32, #tpu.memory_space<vmem>>, %arg16: memref<1x128xf32, #tpu.memory_space<vmem>>, %arg17: memref<1x128xf32, #tpu.memory_space<vmem>>, %arg18: memref<2x16x128xf32, #tpu.memory_space<vmem>>) attributes {dimension_semantics = [#tpu.dimension_semantics<parallel>], iteration_bounds = array<i64: 2>, scalar_prefetch = 0 : i64, scratch_operands = 0 : i64, tpu.core_type = #tpu.core_type<tc>, window_params = [{transform_indices = @transform_0, window_bounds = array<i64: 2, 16, 128>}, {pipeline_mode = #tpu.pipeline_mode<synchronous>, transform_indices = @transform_1, window_bounds = array<i64: 128, 128>}, {pipeline_mode = #tpu.pipeline_mode<synchronous>, transform_indices = @transform_2, window_bounds = array<i64: 1, 128>}, {pipeline_mode = #tpu.pipeline_mode<synchronous>, transform_indices = @transform_3, window_bounds = array<i64: 128, 128>}, {pipeline_mode = #tpu.pipeline_mode<synchronous>, transform_indices = @transform_4, window_bounds = array<i64: 1, 128>}, {pipeline_mode = #tpu.pipeline_mode<synchronous>, transform_indices = @transform_5, window_bounds = array<i64: 128, 128>}, {pipeline_mode = #tpu.pipeline_mode<synchronous>, transform_indices = @transform_6, window_bounds = array<i64: 1, 128>}, {pipeline_mode = #tpu.pipeline_mode<synchronous>, transform_indices = @transform_7, window_bounds = array<i64: 128, 128>}, {pipeline_mode = #tpu.pipeline_mode<synchronous>, transform_indices = @transform_8, window_bounds = array<i64: 1, 128>}, {pipeline_mode = #tpu.pipeline_mode<synchronous>, transform_indices = @transform_9, window_bounds = array<i64: 1, 128>}, {pipeline_mode = #tpu.pipeline_mode<synchronous>, transform_indices = @transform_10, window_bounds = array<i64: 1, 128>}, {pipeline_mode = #tpu.pipeline_mode<synchronous>, transform_indices = @transform_11, window_bounds = array<i64: 128, 256>}, {pipeline_mode = #tpu.pipeline_mode<synchronous>, transform_indices = @transform_12, window_bounds = array<i64: 1, 256>}, {pipeline_mode = #tpu.pipeline_mode<synchronous>, transform_indices = @transform_13, window_bounds = array<i64: 256, 128>}, {pipeline_mode = #tpu.pipeline_mode<synchronous>, transform_indices = @transform_14, window_bounds = array<i64: 1, 128>}, {pipeline_mode = #tpu.pipeline_mode<synchronous>, transform_indices = @transform_15, window_bounds = array<i64: 1, 128>}, {pipeline_mode = #tpu.pipeline_mode<synchronous>, transform_indices = @transform_16, window_bounds = array<i64: 1, 128>}, {transform_indices = @transform_17, window_bounds = array<i64: 2, 16, 128>}]} {
    %c0 = arith.constant 0 : index
    %c0_0 = arith.constant 0 : index
    %c0_1 = arith.constant 0 : index
    %0 = vector.load %arg1[%c0, %c0_0, %c0_1] : memref<2x16x128xf32, #tpu.memory_space<vmem>>, vector<2x16x128xf32>
    %1 = vector.shape_cast %0 : vector<2x16x128xf32> to vector<32x128xf32>
    %2 = arith.truncf %1 : vector<32x128xf32> to vector<32x128xbf16>
    %c0_2 = arith.constant 0 : index
    %c0_3 = arith.constant 0 : index
    %3 = vector.load %arg2[%c0_2, %c0_3] : memref<128x128xbf16, #tpu.memory_space<vmem>>, vector<128x128xbf16>
    %cst = arith.constant dense<0.000000e+00> : vector<32x128xf32>
    %4 = tpu.matmul %2, %3, %cst {dimension_numbers = #tpu.dot_dimension_numbers<[1], [0], [0], [1], [0, 0, 1, 1], [], []>} : vector<32x128xbf16>, vector<128x128xbf16>, vector<32x128xf32> -> vector<32x128xf32>
    %c0_4 = arith.constant 0 : index
    %c0_5 = arith.constant 0 : index
    %5 = vector.load %arg3[%c0_4, %c0_5] : memref<1x128xf32, #tpu.memory_space<vmem>>, vector<1x128xf32>
    %6 = vector.broadcast %5 : vector<1x128xf32> to vector<32x128xf32>
    %7 = arith.addf %4, %6 : vector<32x128xf32>
    %c0_6 = arith.constant 0 : index
    %c0_7 = arith.constant 0 : index
    %8 = vector.load %arg4[%c0_6, %c0_7] : memref<128x128xbf16, #tpu.memory_space<vmem>>, vector<128x128xbf16>
    %cst_8 = arith.constant dense<0.000000e+00> : vector<32x128xf32>
    %9 = tpu.matmul %2, %8, %cst_8 {dimension_numbers = #tpu.dot_dimension_numbers<[1], [0], [0], [1], [0, 0, 1, 1], [], []>} : vector<32x128xbf16>, vector<128x128xbf16>, vector<32x128xf32> -> vector<32x128xf32>
    %c0_9 = arith.constant 0 : index
    %c0_10 = arith.constant 0 : index
    %10 = vector.load %arg5[%c0_9, %c0_10] : memref<1x128xf32, #tpu.memory_space<vmem>>, vector<1x128xf32>
    %11 = vector.broadcast %10 : vector<1x128xf32> to vector<32x128xf32>
    %12 = arith.addf %9, %11 : vector<32x128xf32>
    %c0_11 = arith.constant 0 : index
    %c0_12 = arith.constant 0 : index
    %13 = vector.load %arg6[%c0_11, %c0_12] : memref<128x128xbf16, #tpu.memory_space<vmem>>, vector<128x128xbf16>
    %cst_13 = arith.constant dense<0.000000e+00> : vector<32x128xf32>
    %14 = tpu.matmul %2, %13, %cst_13 {dimension_numbers = #tpu.dot_dimension_numbers<[1], [0], [0], [1], [0, 0, 1, 1], [], []>} : vector<32x128xbf16>, vector<128x128xbf16>, vector<32x128xf32> -> vector<32x128xf32>
    %c0_14 = arith.constant 0 : index
    %c0_15 = arith.constant 0 : index
    %15 = vector.load %arg7[%c0_14, %c0_15] : memref<1x128xf32, #tpu.memory_space<vmem>>, vector<1x128xf32>
    %16 = vector.broadcast %15 : vector<1x128xf32> to vector<32x128xf32>
    %17 = arith.addf %14, %16 : vector<32x128xf32>
    %cst_16 = arith.constant 0.176776692 : f32
    %18 = vector.broadcast %cst_16 : f32 to vector<32x128xf32>
    %19 = arith.mulf %7, %18 : vector<32x128xf32>
    %20 = arith.truncf %19 : vector<32x128xf32> to vector<32x128xbf16>
    %21 = vector.shape_cast %20 : vector<32x128xbf16> to vector<2x16x128xbf16>
    %22 = arith.truncf %12 : vector<32x128xf32> to vector<32x128xbf16>
    %23 = vector.shape_cast %22 : vector<32x128xbf16> to vector<2x16x128xbf16>
    %24 = arith.truncf %17 : vector<32x128xf32> to vector<32x128xbf16>
    %25 = vector.shape_cast %24 : vector<32x128xbf16> to vector<2x16x128xbf16>
    %cst_17 = arith.constant 0.000000e+00 : f32
    %26 = vector.broadcast %cst_17 : f32 to vector<32x128xf32>
    %27 = vector.extract_strided_slice %21 {offsets = [0, 0, 0], sizes = [2, 16, 32], strides = [1, 1, 1]} : vector<2x16x128xbf16> to vector<2x16x32xbf16>
    %28 = vector.extract_strided_slice %23 {offsets = [0, 0, 0], sizes = [2, 16, 32], strides = [1, 1, 1]} : vector<2x16x128xbf16> to vector<2x16x32xbf16>
    %29 = vector.extract_strided_slice %25 {offsets = [0, 0, 0], sizes = [2, 16, 32], strides = [1, 1, 1]} : vector<2x16x128xbf16> to vector<2x16x32xbf16>
    "tpu.trace_start"() <{level = 10 : i32, message = "bqd,bkd->bqk"}> : () -> ()
    %cst_18 = arith.constant dense<0.000000e+00> : vector<2x16x16xf32>
    %30 = tpu.matmul %27, %28, %cst_18 {dimension_numbers = #tpu.dot_dimension_numbers<[2], [2], [1], [1], [0, 0, 0, 1, 1, 1], [0], [0]>} : vector<2x16x32xbf16>, vector<2x16x32xbf16>, vector<2x16x16xf32> -> vector<2x16x16xf32>
    "tpu.trace_stop"() : () -> ()
    %cst_19 = arith.constant dense<0xFF800000> : vector<2x16xf32>
    %31 = vector.multi_reduction <maximumf>, %30, %cst_19 [2] : vector<2x16x16xf32> to vector<2x16xf32>
    %32 = vector.shape_cast %31 : vector<2x16xf32> to vector<2x16x1xf32>
    %33 = vector.broadcast %32 : vector<2x16x1xf32> to vector<2x16x16xf32>
    %34 = arith.subf %30, %33 : vector<2x16x16xf32>
    %35 = math.exp %34 : vector<2x16x16xf32>
    %cst_20 = arith.constant dense<0.000000e+00> : vector<2x16xf32>
    %36 = vector.multi_reduction <add>, %35, %cst_20 [2] : vector<2x16x16xf32> to vector<2x16xf32>
    %37 = vector.shape_cast %36 : vector<2x16xf32> to vector<2x16x1xf32>
    %38 = tpu.reciprocal %37 {approx = true} : vector<2x16x1xf32> -> vector<2x16x1xf32>
    %39 = vector.broadcast %38 : vector<2x16x1xf32> to vector<2x16x16xf32>
    %40 = arith.mulf %35, %39 : vector<2x16x16xf32>
    %41 = arith.truncf %40 : vector<2x16x16xf32> to vector<2x16x16xbf16>
    "tpu.trace_start"() <{level = 10 : i32, message = "bqk,bkd->bqd"}> : () -> ()
    %cst_21 = arith.constant dense<0.000000e+00> : vector<2x16x32xf32>
    %42 = tpu.matmul %41, %29, %cst_21 {dimension_numbers = #tpu.dot_dimension_numbers<[2], [1], [1], [2], [0, 0, 0, 1, 1, 2], [0], [0]>} : vector<2x16x16xbf16>, vector<2x16x32xbf16>, vector<2x16x32xf32> -> vector<2x16x32xf32>
    "tpu.trace_stop"() : () -> ()
    %43 = arith.truncf %42 : vector<2x16x32xf32> to vector<2x16x32xbf16>
    %44 = vector.shape_cast %43 : vector<2x16x32xbf16> to vector<32x32xbf16>
    %c0_22 = arith.constant 0 : index
    %c0_23 = arith.constant 0 : index
    %45 = vector.load %arg8[%c0_22, %c0_23] : memref<128x128xbf16, #tpu.memory_space<vmem>>, vector<32x128xbf16>
    %cst_24 = arith.constant dense<0.000000e+00> : vector<32x128xf32>
    %46 = tpu.matmul %44, %45, %cst_24 {dimension_numbers = #tpu.dot_dimension_numbers<[1], [0], [0], [1], [0, 0, 1, 1], [], []>} : vector<32x32xbf16>, vector<32x128xbf16>, vector<32x128xf32> -> vector<32x128xf32>
    %47 = arith.addf %26, %46 : vector<32x128xf32>
    %48 = vector.extract_strided_slice %21 {offsets = [0, 0, 32], sizes = [2, 16, 32], strides = [1, 1, 1]} : vector<2x16x128xbf16> to vector<2x16x32xbf16>
    %49 = vector.extract_strided_slice %23 {offsets = [0, 0, 32], sizes = [2, 16, 32], strides = [1, 1, 1]} : vector<2x16x128xbf16> to vector<2x16x32xbf16>
    %50 = vector.extract_strided_slice %25 {offsets = [0, 0, 32], sizes = [2, 16, 32], strides = [1, 1, 1]} : vector<2x16x128xbf16> to vector<2x16x32xbf16>
    "tpu.trace_start"() <{level = 10 : i32, message = "bqd,bkd->bqk"}> : () -> ()
    %cst_25 = arith.constant dense<0.000000e+00> : vector<2x16x16xf32>
    %51 = tpu.matmul %48, %49, %cst_25 {dimension_numbers = #tpu.dot_dimension_numbers<[2], [2], [1], [1], [0, 0, 0, 1, 1, 1], [0], [0]>} : vector<2x16x32xbf16>, vector<2x16x32xbf16>, vector<2x16x16xf32> -> vector<2x16x16xf32>
    "tpu.trace_stop"() : () -> ()
    %cst_26 = arith.constant dense<0xFF800000> : vector<2x16xf32>
    %52 = vector.multi_reduction <maximumf>, %51, %cst_26 [2] : vector<2x16x16xf32> to vector<2x16xf32>
    %53 = vector.shape_cast %52 : vector<2x16xf32> to vector<2x16x1xf32>
    %54 = vector.broadcast %53 : vector<2x16x1xf32> to vector<2x16x16xf32>
    %55 = arith.subf %51, %54 : vector<2x16x16xf32>
    %56 = math.exp %55 : vector<2x16x16xf32>
    %cst_27 = arith.constant dense<0.000000e+00> : vector<2x16xf32>
    %57 = vector.multi_reduction <add>, %56, %cst_27 [2] : vector<2x16x16xf32> to vector<2x16xf32>
    %58 = vector.shape_cast %57 : vector<2x16xf32> to vector<2x16x1xf32>
    %59 = tpu.reciprocal %58 {approx = true} : vector<2x16x1xf32> -> vector<2x16x1xf32>
    %60 = vector.broadcast %59 : vector<2x16x1xf32> to vector<2x16x16xf32>
    %61 = arith.mulf %56, %60 : vector<2x16x16xf32>
    %62 = arith.truncf %61 : vector<2x16x16xf32> to vector<2x16x16xbf16>
    "tpu.trace_start"() <{level = 10 : i32, message = "bqk,bkd->bqd"}> : () -> ()
    %cst_28 = arith.constant dense<0.000000e+00> : vector<2x16x32xf32>
    %63 = tpu.matmul %62, %50, %cst_28 {dimension_numbers = #tpu.dot_dimension_numbers<[2], [1], [1], [2], [0, 0, 0, 1, 1, 2], [0], [0]>} : vector<2x16x16xbf16>, vector<2x16x32xbf16>, vector<2x16x32xf32> -> vector<2x16x32xf32>
    "tpu.trace_stop"() : () -> ()
    %64 = arith.truncf %63 : vector<2x16x32xf32> to vector<2x16x32xbf16>
    %65 = vector.shape_cast %64 : vector<2x16x32xbf16> to vector<32x32xbf16>
    %c32 = arith.constant 32 : index
    %c0_29 = arith.constant 0 : index
    %66 = vector.load %arg8[%c32, %c0_29] : memref<128x128xbf16, #tpu.memory_space<vmem>>, vector<32x128xbf16>
    %cst_30 = arith.constant dense<0.000000e+00> : vector<32x128xf32>
    %67 = tpu.matmul %65, %66, %cst_30 {dimension_numbers = #tpu.dot_dimension_numbers<[1], [0], [0], [1], [0, 0, 1, 1], [], []>} : vector<32x32xbf16>, vector<32x128xbf16>, vector<32x128xf32> -> vector<32x128xf32>
    %68 = arith.addf %47, %67 : vector<32x128xf32>
    %69 = vector.extract_strided_slice %21 {offsets = [0, 0, 64], sizes = [2, 16, 32], strides = [1, 1, 1]} : vector<2x16x128xbf16> to vector<2x16x32xbf16>
    %70 = vector.extract_strided_slice %23 {offsets = [0, 0, 64], sizes = [2, 16, 32], strides = [1, 1, 1]} : vector<2x16x128xbf16> to vector<2x16x32xbf16>
    %71 = vector.extract_strided_slice %25 {offsets = [0, 0, 64], sizes = [2, 16, 32], strides = [1, 1, 1]} : vector<2x16x128xbf16> to vector<2x16x32xbf16>
    "tpu.trace_start"() <{level = 10 : i32, message = "bqd,bkd->bqk"}> : () -> ()
    %cst_31 = arith.constant dense<0.000000e+00> : vector<2x16x16xf32>
    %72 = tpu.matmul %69, %70, %cst_31 {dimension_numbers = #tpu.dot_dimension_numbers<[2], [2], [1], [1], [0, 0, 0, 1, 1, 1], [0], [0]>} : vector<2x16x32xbf16>, vector<2x16x32xbf16>, vector<2x16x16xf32> -> vector<2x16x16xf32>
    "tpu.trace_stop"() : () -> ()
    %cst_32 = arith.constant dense<0xFF800000> : vector<2x16xf32>
    %73 = vector.multi_reduction <maximumf>, %72, %cst_32 [2] : vector<2x16x16xf32> to vector<2x16xf32>
    %74 = vector.shape_cast %73 : vector<2x16xf32> to vector<2x16x1xf32>
    %75 = vector.broadcast %74 : vector<2x16x1xf32> to vector<2x16x16xf32>
    %76 = arith.subf %72, %75 : vector<2x16x16xf32>
    %77 = math.exp %76 : vector<2x16x16xf32>
    %cst_33 = arith.constant dense<0.000000e+00> : vector<2x16xf32>
    %78 = vector.multi_reduction <add>, %77, %cst_33 [2] : vector<2x16x16xf32> to vector<2x16xf32>
    %79 = vector.shape_cast %78 : vector<2x16xf32> to vector<2x16x1xf32>
    %80 = tpu.reciprocal %79 {approx = true} : vector<2x16x1xf32> -> vector<2x16x1xf32>
    %81 = vector.broadcast %80 : vector<2x16x1xf32> to vector<2x16x16xf32>
    %82 = arith.mulf %77, %81 : vector<2x16x16xf32>
    %83 = arith.truncf %82 : vector<2x16x16xf32> to vector<2x16x16xbf16>
    "tpu.trace_start"() <{level = 10 : i32, message = "bqk,bkd->bqd"}> : () -> ()
    %cst_34 = arith.constant dense<0.000000e+00> : vector<2x16x32xf32>
    %84 = tpu.matmul %83, %71, %cst_34 {dimension_numbers = #tpu.dot_dimension_numbers<[2], [1], [1], [2], [0, 0, 0, 1, 1, 2], [0], [0]>} : vector<2x16x16xbf16>, vector<2x16x32xbf16>, vector<2x16x32xf32> -> vector<2x16x32xf32>
    "tpu.trace_stop"() : () -> ()
    %85 = arith.truncf %84 : vector<2x16x32xf32> to vector<2x16x32xbf16>
    %86 = vector.shape_cast %85 : vector<2x16x32xbf16> to vector<32x32xbf16>
    %c64 = arith.constant 64 : index
    %c0_35 = arith.constant 0 : index
    %87 = vector.load %arg8[%c64, %c0_35] : memref<128x128xbf16, #tpu.memory_space<vmem>>, vector<32x128xbf16>
    %cst_36 = arith.constant dense<0.000000e+00> : vector<32x128xf32>
    %88 = tpu.matmul %86, %87, %cst_36 {dimension_numbers = #tpu.dot_dimension_numbers<[1], [0], [0], [1], [0, 0, 1, 1], [], []>} : vector<32x32xbf16>, vector<32x128xbf16>, vector<32x128xf32> -> vector<32x128xf32>
    %89 = arith.addf %68, %88 : vector<32x128xf32>
    %90 = vector.extract_strided_slice %21 {offsets = [0, 0, 96], sizes = [2, 16, 32], strides = [1, 1, 1]} : vector<2x16x128xbf16> to vector<2x16x32xbf16>
    %91 = vector.extract_strided_slice %23 {offsets = [0, 0, 96], sizes = [2, 16, 32], strides = [1, 1, 1]} : vector<2x16x128xbf16> to vector<2x16x32xbf16>
    %92 = vector.extract_strided_slice %25 {offsets = [0, 0, 96], sizes = [2, 16, 32], strides = [1, 1, 1]} : vector<2x16x128xbf16> to vector<2x16x32xbf16>
    "tpu.trace_start"() <{level = 10 : i32, message = "bqd,bkd->bqk"}> : () -> ()
    %cst_37 = arith.constant dense<0.000000e+00> : vector<2x16x16xf32>
    %93 = tpu.matmul %90, %91, %cst_37 {dimension_numbers = #tpu.dot_dimension_numbers<[2], [2], [1], [1], [0, 0, 0, 1, 1, 1], [0], [0]>} : vector<2x16x32xbf16>, vector<2x16x32xbf16>, vector<2x16x16xf32> -> vector<2x16x16xf32>
    "tpu.trace_stop"() : () -> ()
    %cst_38 = arith.constant dense<0xFF800000> : vector<2x16xf32>
    %94 = vector.multi_reduction <maximumf>, %93, %cst_38 [2] : vector<2x16x16xf32> to vector<2x16xf32>
    %95 = vector.shape_cast %94 : vector<2x16xf32> to vector<2x16x1xf32>
    %96 = vector.broadcast %95 : vector<2x16x1xf32> to vector<2x16x16xf32>
    %97 = arith.subf %93, %96 : vector<2x16x16xf32>
    %98 = math.exp %97 : vector<2x16x16xf32>
    %cst_39 = arith.constant dense<0.000000e+00> : vector<2x16xf32>
    %99 = vector.multi_reduction <add>, %98, %cst_39 [2] : vector<2x16x16xf32> to vector<2x16xf32>
    %100 = vector.shape_cast %99 : vector<2x16xf32> to vector<2x16x1xf32>
    %101 = tpu.reciprocal %100 {approx = true} : vector<2x16x1xf32> -> vector<2x16x1xf32>
    %102 = vector.broadcast %101 : vector<2x16x1xf32> to vector<2x16x16xf32>
    %103 = arith.mulf %98, %102 : vector<2x16x16xf32>
    %104 = arith.truncf %103 : vector<2x16x16xf32> to vector<2x16x16xbf16>
    "tpu.trace_start"() <{level = 10 : i32, message = "bqk,bkd->bqd"}> : () -> ()
    %cst_40 = arith.constant dense<0.000000e+00> : vector<2x16x32xf32>
    %105 = tpu.matmul %104, %92, %cst_40 {dimension_numbers = #tpu.dot_dimension_numbers<[2], [1], [1], [2], [0, 0, 0, 1, 1, 2], [0], [0]>} : vector<2x16x16xbf16>, vector<2x16x32xbf16>, vector<2x16x32xf32> -> vector<2x16x32xf32>
    "tpu.trace_stop"() : () -> ()
    %106 = arith.truncf %105 : vector<2x16x32xf32> to vector<2x16x32xbf16>
    %107 = vector.shape_cast %106 : vector<2x16x32xbf16> to vector<32x32xbf16>
    %c96 = arith.constant 96 : index
    %c0_41 = arith.constant 0 : index
    %108 = vector.load %arg8[%c96, %c0_41] : memref<128x128xbf16, #tpu.memory_space<vmem>>, vector<32x128xbf16>
    %cst_42 = arith.constant dense<0.000000e+00> : vector<32x128xf32>
    %109 = tpu.matmul %107, %108, %cst_42 {dimension_numbers = #tpu.dot_dimension_numbers<[1], [0], [0], [1], [0, 0, 1, 1], [], []>} : vector<32x32xbf16>, vector<32x128xbf16>, vector<32x128xf32> -> vector<32x128xf32>
    %110 = arith.addf %89, %109 : vector<32x128xf32>
    %c0_43 = arith.constant 0 : index
    %c0_44 = arith.constant 0 : index
    %111 = vector.load %arg9[%c0_43, %c0_44] : memref<1x128xf32, #tpu.memory_space<vmem>>, vector<1x128xf32>
    %112 = vector.broadcast %111 : vector<1x128xf32> to vector<32x128xf32>
    %113 = arith.addf %110, %112 : vector<32x128xf32>
    %114 = arith.addf %113, %1 : vector<32x128xf32>
    %c0_45 = arith.constant 0 : index
    %c0_46 = arith.constant 0 : index
    %115 = vector.load %arg10[%c0_45, %c0_46] : memref<1x128xf32, #tpu.memory_space<vmem>>, vector<1x128xf32>
    %c0_47 = arith.constant 0 : index
    %c0_48 = arith.constant 0 : index
    %116 = vector.load %arg11[%c0_47, %c0_48] : memref<1x128xf32, #tpu.memory_space<vmem>>, vector<1x128xf32>
    %cst_49 = arith.constant dense<0.000000e+00> : vector<32xf32>
    %117 = vector.multi_reduction <add>, %114, %cst_49 [1] : vector<32x128xf32> to vector<32xf32>
    %118 = vector.shape_cast %117 : vector<32xf32> to vector<32x1xf32>
    %cst_50 = arith.constant 1.280000e+02 : f32
    %119 = vector.broadcast %cst_50 : f32 to vector<32x1xf32>
    %120 = arith.divf %118, %119 : vector<32x1xf32>
    %121 = vector.broadcast %120 : vector<32x1xf32> to vector<32x128xf32>
    %122 = arith.subf %114, %121 : vector<32x128xf32>
    %123 = arith.mulf %122, %122 : vector<32x128xf32>
    %cst_51 = arith.constant dense<0.000000e+00> : vector<32xf32>
    %124 = vector.multi_reduction <add>, %123, %cst_51 [1] : vector<32x128xf32> to vector<32xf32>
    %125 = vector.shape_cast %124 : vector<32xf32> to vector<32x1xf32>
    %cst_52 = arith.constant 1.280000e+02 : f32
    %126 = vector.broadcast %cst_52 : f32 to vector<32x1xf32>
    %127 = arith.divf %125, %126 : vector<32x1xf32>
    %128 = vector.broadcast %120 : vector<32x1xf32> to vector<32x128xf32>
    %129 = arith.subf %114, %128 : vector<32x128xf32>
    %cst_53 = arith.constant 9.99999974E-6 : f32
    %130 = vector.broadcast %cst_53 : f32 to vector<32x1xf32>
    %131 = arith.addf %127, %130 : vector<32x1xf32>
    %132 = math.rsqrt %131 : vector<32x1xf32>
    %133 = vector.broadcast %132 : vector<32x1xf32> to vector<32x128xf32>
    %134 = arith.mulf %129, %133 : vector<32x128xf32>
    %135 = vector.broadcast %115 : vector<1x128xf32> to vector<32x128xf32>
    %136 = arith.mulf %134, %135 : vector<32x128xf32>
    %137 = vector.broadcast %116 : vector<1x128xf32> to vector<32x128xf32>
    %138 = arith.addf %136, %137 : vector<32x128xf32>
    %139 = arith.truncf %138 : vector<32x128xf32> to vector<32x128xbf16>
    %c0_54 = arith.constant 0 : index
    %c0_55 = arith.constant 0 : index
    %140 = vector.load %arg12[%c0_54, %c0_55] : memref<128x256xbf16, #tpu.memory_space<vmem>>, vector<128x256xbf16>
    %cst_56 = arith.constant dense<0.000000e+00> : vector<32x256xf32>
    %141 = tpu.matmul %139, %140, %cst_56 {dimension_numbers = #tpu.dot_dimension_numbers<[1], [0], [0], [1], [0, 0, 1, 1], [], []>} : vector<32x128xbf16>, vector<128x256xbf16>, vector<32x256xf32> -> vector<32x256xf32>
    %c0_57 = arith.constant 0 : index
    %c0_58 = arith.constant 0 : index
    %142 = vector.load %arg13[%c0_57, %c0_58] : memref<1x256xf32, #tpu.memory_space<vmem>>, vector<1x256xf32>
    %143 = vector.broadcast %142 : vector<1x256xf32> to vector<32x256xf32>
    %144 = arith.addf %141, %143 : vector<32x256xf32>
    %cst_59 = arith.constant 0.000000e+00 : f32
    %145 = vector.broadcast %cst_59 : f32 to vector<32x256xf32>
    %146 = arith.maximumf %144, %145 : vector<32x256xf32>
    %147 = arith.truncf %146 : vector<32x256xf32> to vector<32x256xbf16>
    %c0_60 = arith.constant 0 : index
    %c0_61 = arith.constant 0 : index
    %148 = vector.load %arg14[%c0_60, %c0_61] : memref<256x128xbf16, #tpu.memory_space<vmem>>, vector<256x128xbf16>
    %cst_62 = arith.constant dense<0.000000e+00> : vector<32x128xf32>
    %149 = tpu.matmul %147, %148, %cst_62 {dimension_numbers = #tpu.dot_dimension_numbers<[1], [0], [0], [1], [0, 0, 1, 1], [], []>} : vector<32x256xbf16>, vector<256x128xbf16>, vector<32x128xf32> -> vector<32x128xf32>
    %c0_63 = arith.constant 0 : index
    %c0_64 = arith.constant 0 : index
    %150 = vector.load %arg15[%c0_63, %c0_64] : memref<1x128xf32, #tpu.memory_space<vmem>>, vector<1x128xf32>
    %151 = vector.broadcast %150 : vector<1x128xf32> to vector<32x128xf32>
    %152 = arith.addf %149, %151 : vector<32x128xf32>
    %153 = arith.addf %152, %138 : vector<32x128xf32>
    %c0_65 = arith.constant 0 : index
    %c0_66 = arith.constant 0 : index
    %154 = vector.load %arg16[%c0_65, %c0_66] : memref<1x128xf32, #tpu.memory_space<vmem>>, vector<1x128xf32>
    %c0_67 = arith.constant 0 : index
    %c0_68 = arith.constant 0 : index
    %155 = vector.load %arg17[%c0_67, %c0_68] : memref<1x128xf32, #tpu.memory_space<vmem>>, vector<1x128xf32>
    %cst_69 = arith.constant dense<0.000000e+00> : vector<32xf32>
    %156 = vector.multi_reduction <add>, %153, %cst_69 [1] : vector<32x128xf32> to vector<32xf32>
    %157 = vector.shape_cast %156 : vector<32xf32> to vector<32x1xf32>
    %cst_70 = arith.constant 1.280000e+02 : f32
    %158 = vector.broadcast %cst_70 : f32 to vector<32x1xf32>
    %159 = arith.divf %157, %158 : vector<32x1xf32>
    %160 = vector.broadcast %159 : vector<32x1xf32> to vector<32x128xf32>
    %161 = arith.subf %153, %160 : vector<32x128xf32>
    %162 = arith.mulf %161, %161 : vector<32x128xf32>
    %cst_71 = arith.constant dense<0.000000e+00> : vector<32xf32>
    %163 = vector.multi_reduction <add>, %162, %cst_71 [1] : vector<32x128xf32> to vector<32xf32>
    %164 = vector.shape_cast %163 : vector<32xf32> to vector<32x1xf32>
    %cst_72 = arith.constant 1.280000e+02 : f32
    %165 = vector.broadcast %cst_72 : f32 to vector<32x1xf32>
    %166 = arith.divf %164, %165 : vector<32x1xf32>
    %167 = vector.broadcast %159 : vector<32x1xf32> to vector<32x128xf32>
    %168 = arith.subf %153, %167 : vector<32x128xf32>
    %cst_73 = arith.constant 9.99999974E-6 : f32
    %169 = vector.broadcast %cst_73 : f32 to vector<32x1xf32>
    %170 = arith.addf %166, %169 : vector<32x1xf32>
    %171 = math.rsqrt %170 : vector<32x1xf32>
    %172 = vector.broadcast %171 : vector<32x1xf32> to vector<32x128xf32>
    %173 = arith.mulf %168, %172 : vector<32x128xf32>
    %174 = vector.broadcast %154 : vector<1x128xf32> to vector<32x128xf32>
    %175 = arith.mulf %173, %174 : vector<32x128xf32>
    %176 = vector.broadcast %155 : vector<1x128xf32> to vector<32x128xf32>
    %177 = arith.addf %175, %176 : vector<32x128xf32>
    %178 = vector.shape_cast %177 : vector<32x128xf32> to vector<2x16x128xf32>
    %c0_74 = arith.constant 0 : index
    %c0_75 = arith.constant 0 : index
    %c0_76 = arith.constant 0 : index
    %179 = vector.load %arg18[%c0_74, %c0_75, %c0_76] : memref<2x16x128xf32, #tpu.memory_space<vmem>>, vector<2x16x128xf32>
    tpu.vector_store %arg18[%c0_74, %c0_75, %c0_76], %178 {strides = array<i32>} : memref<2x16x128xf32, #tpu.memory_space<vmem>>, vector<2x16x128xf32>,
    return
  }
  func.func @transform_0(%arg0: i32) -> (i32, i32, i32) {
    %c0_i32 = arith.constant 0 : i32
    %c0_i32_0 = arith.constant 0 : i32
    %c0_i32_1 = arith.constant 0 : i32
    return %arg0, %c0_i32, %c0_i32_0 : i32, i32, i32
  }
  func.func @transform_1(%arg0: i32) -> (i32, i32) {
    %c0_i32 = arith.constant 0 : i32
    %c0_i32_0 = arith.constant 0 : i32
    %c0_i32_1 = arith.constant 0 : i32
    return %c0_i32, %c0_i32_0 : i32, i32
  }
  func.func @transform_2(%arg0: i32) -> (i32, i32) {
    %c0_i32 = arith.constant 0 : i32
    %c0_i32_0 = arith.constant 0 : i32
    %c0_i32_1 = arith.constant 0 : i32
    return %c0_i32, %c0_i32_0 : i32, i32
  }
  func.func @transform_3(%arg0: i32) -> (i32, i32) {
    %c0_i32 = arith.constant 0 : i32
    %c0_i32_0 = arith.constant 0 : i32
    %c0_i32_1 = arith.constant 0 : i32
    return %c0_i32, %c0_i32_0 : i32, i32
  }
  func.func @transform_4(%arg0: i32) -> (i32, i32) {
    %c0_i32 = arith.constant 0 : i32
    %c0_i32_0 = arith.constant 0 : i32
    %c0_i32_1 = arith.constant 0 : i32
    return %c0_i32, %c0_i32_0 : i32, i32
  }
  func.func @transform_5(%arg0: i32) -> (i32, i32) {
    %c0_i32 = arith.constant 0 : i32
    %c0_i32_0 = arith.constant 0 : i32
    %c0_i32_1 = arith.constant 0 : i32
    return %c0_i32, %c0_i32_0 : i32, i32
  }
  func.func @transform_6(%arg0: i32) -> (i32, i32) {
    %c0_i32 = arith.constant 0 : i32
    %c0_i32_0 = arith.constant 0 : i32
    %c0_i32_1 = arith.constant 0 : i32
    return %c0_i32, %c0_i32_0 : i32, i32
  }
  func.func @transform_7(%arg0: i32) -> (i32, i32) {
    %c0_i32 = arith.constant 0 : i32
    %c0_i32_0 = arith.constant 0 : i32
    %c0_i32_1 = arith.constant 0 : i32
    return %c0_i32, %c0_i32_0 : i32, i32
  }
  func.func @transform_8(%arg0: i32) -> (i32, i32) {
    %c0_i32 = arith.constant 0 : i32
    %c0_i32_0 = arith.constant 0 : i32
    %c0_i32_1 = arith.constant 0 : i32
    return %c0_i32, %c0_i32_0 : i32, i32
  }
  func.func @transform_9(%arg0: i32) -> (i32, i32) {
    %c0_i32 = arith.constant 0 : i32
    %c0_i32_0 = arith.constant 0 : i32
    %c0_i32_1 = arith.constant 0 : i32
    return %c0_i32, %c0_i32_0 : i32, i32
  }
  func.func @transform_10(%arg0: i32) -> (i32, i32) {
    %c0_i32 = arith.constant 0 : i32
    %c0_i32_0 = arith.constant 0 : i32
    %c0_i32_1 = arith.constant 0 : i32
    return %c0_i32, %c0_i32_0 : i32, i32
  }
  func.func @transform_11(%arg0: i32) -> (i32, i32) {
    %c0_i32 = arith.constant 0 : i32
    %c0_i32_0 = arith.constant 0 : i32
    %c0_i32_1 = arith.constant 0 : i32
    return %c0_i32, %c0_i32_0 : i32, i32
  }
  func.func @transform_12(%arg0: i32) -> (i32, i32) {
    %c0_i32 = arith.constant 0 : i32
    %c0_i32_0 = arith.constant 0 : i32
    %c0_i32_1 = arith.constant 0 : i32
    return %c0_i32, %c0_i32_0 : i32, i32
  }
  func.func @transform_13(%arg0: i32) -> (i32, i32) {
    %c0_i32 = arith.constant 0 : i32
    %c0_i32_0 = arith.constant 0 : i32
    %c0_i32_1 = arith.constant 0 : i32
    return %c0_i32, %c0_i32_0 : i32, i32
  }
  func.func @transform_14(%arg0: i32) -> (i32, i32) {
    %c0_i32 = arith.constant 0 : i32
    %c0_i32_0 = arith.constant 0 : i32
    %c0_i32_1 = arith.constant 0 : i32
    return %c0_i32, %c0_i32_0 : i32, i32
  }
  func.func @transform_15(%arg0: i32) -> (i32, i32) {
    %c0_i32 = arith.constant 0 : i32
    %c0_i32_0 = arith.constant 0 : i32
    %c0_i32_1 = arith.constant 0 : i32
    return %c0_i32, %c0_i32_0 : i32, i32
  }
  func.func @transform_16(%arg0: i32) -> (i32, i32) {
    %c0_i32 = arith.constant 0 : i32
    %c0_i32_0 = arith.constant 0 : i32
    %c0_i32_1 = arith.constant 0 : i32
    return %c0_i32, %c0_i32_0 : i32, i32
  }
  func.func @transform_17(%arg0: i32) -> (i32, i32, i32) {
    %c0_i32 = arith.constant 0 : i32
    %c0_i32_0 = arith.constant 0 : i32
    %c0_i32_1 = arith.constant 0 : i32
    return %arg0, %c0_i32, %c0_i32_0 : i32, i32, i32
  }
}

</mosaic_0001>

<bundles_post_ra>
// kernel: tpu_custom_call.1
= control target key start
LH: loop header
LB: loop body
LE: loop exit
PB: predicated region body
PF: predicated region fallthrough
CT: control target
= control target key end

     0   :  { %s4598_s0 = inlined_call_operand.hbm [shape: f32[4,16,128], index: 0, kind: input, shape index: {}]   ;;  %s4599_s1 = inlined_call_operand.hbm [shape: bf16[128,128], index: 1, kind: input, shape index: {}]   ;;  %s4600_s2 = inlined_call_operand.vmem [shape: f32[1,128], index: 2, kind: input, shape index: {}]   ;;  %s4601_s3 = inlined_call_operand.hbm [shape: bf16[128,128], index: 3, kind: input, shape index: {}]   ;;  %s4602_s4 = inlined_call_operand.vmem [shape: f32[1,128], index: 4, kind: input, shape index: {}]   ;;  %s4603_s5 = inlined_call_operand.hbm [shape: bf16[128,128], index: 5, kind: input, shape index: {}]   ;;  %s4604_s6 = inlined_call_operand.vmem [shape: f32[1,128], index: 6, kind: input, shape index: {}]   ;;  %s4605_s7 = inlined_call_operand.hbm [shape: bf16[128,128], index: 7, kind: input, shape index: {}]   ;;  %s4606_s8 = inlined_call_operand.vmem [shape: f32[1,128], index: 8, kind: input, shape index: {}]   ;;  %s4607_s9 = inlined_call_operand.vmem [shape: f32[1,128], index: 9, kind: input, shape index: {}]   ;;  %s4608_s10 = inlined_call_operand.vmem [shape: f32[1,128], index: 10, kind: input, shape index: {}]   ;;  %s4609_s11 = inlined_call_operand.hbm [shape: bf16[128,256], index: 11, kind: input, shape index: {}]   ;;  %s4610_s12 = inlined_call_operand.vmem [shape: f32[1,256], index: 12, kind: input, shape index: {}]   ;;  %s4611_s13 = inlined_call_operand.hbm [shape: bf16[256,128], index: 13, kind: input, shape index: {}]   ;;  %s4612_s14 = inlined_call_operand.vmem [shape: f32[1,128], index: 14, kind: input, shape index: {}]   ;;  %s4613_s15 = inlined_call_operand.vmem [shape: f32[1,128], index: 15, kind: input, shape index: {}]   ;;  %s4614_s16 = inlined_call_operand.vmem [shape: f32[1,128], index: 16, kind: input, shape index: {}]   ;;  %s4615_s17 = inlined_call_operand.hbm [shape: f32[4,16,128], index: 17, kind: output, shape index: {}]  }
   0x1   :  { %4629 = sst [smem:[#allocation22_spill]] %s4598_s0 }
   0x2   :  { %4630 = sst [smem:[#allocation23_spill]] %s4599_s1 }
   0x3   :  { %4631 = sst [smem:[#allocation24_spill]] %s4601_s3 }
   0x4   :  { %4632 = sst [smem:[#allocation25_spill]] %s4603_s5 }
   0x5   :  { %4633 = sst [smem:[#allocation26_spill]] %s4605_s7 }
   0x6   :  { %4634 = sst [smem:[#allocation27_spill]] %s4609_s11 }
   0x7   :  { %4635 = sst [smem:[#allocation28_spill]] %s4611_s13 }
   0x8   :  { %4636 = sst [smem:[#allocation29_spill]] %s4613_s15 }
   0x9   :  { %4637 = sst [smem:[#allocation30_spill]] %s4614_s16 }
   0xa   :  { %4638 = sst [smem:[#allocation31_spill]] %s4615_s17 }
   0xb   :  { %22 = vsyncpa [#allocation3], 0 }
   0xc   :  { %24 = vsyncpa [#allocation3 + $0x1], 0 }
   0xd   :  { %25 = vsyncpa [#allocation6], 0 }
   0xe   :  { %26 = vsyncpa [#allocation9], 0 }
   0xf   :  { %27 = vsyncpa [#allocation12], 0 }
  0x10   :  { %28 = vsyncpa [#allocation4], 0 }
  0x11   :  { %30 = vsyncpa [#allocation4 + $0x1], 0  ;;  %s4026_s24 = smov 0   ;;  %s4028_s25 = smov 0  }
  0x12   :  { %s4030_s26 = smov 0   ;;  %s4032_s27 = smov 0  }
  0x13 LB: > { %4639 = sst [smem:[#allocation20_spill]] %s3910_s26  ;;  %s3916_s28 = smov [#allocation5]   ;;  %s3914_s27 = sphi %s4032_s27, %s4678_s27   ;;  %s3910_s26 = sphi %s4030_s26, %s4675_s26   ;;  %s3906_s25 = sphi %s4028_s25, %s4677_s25   ;;  %s3902_s24 = sphi %s4026_s24, %s4676_s24  }
  0x14   : > { %s441_s29 = sshll.u32 %s3916_s28, 4  ;;  %s4047_s0 = sadd.s32 4294967295, %s3914_s27   ;;  %s442_s29 = int_to_ptr.vmem [resolvable:$true] %s441_s29 }
  0x15   : > { %p2957_p0 = scmp.ge.s32.totalorder %s3914_s27, 1  ;;  %p4624_p1 = scmp.eq.s32.totalorder %s4047_s0, 0 }
  0x16   : > { %p429_p2 = scmp.lt.s32.totalorder %s3914_s27, 3  ;;  %s3917_s18 = smov [#allocation8]  }
  0x17   : > { %s473_s19 = sshll.u32 %s3917_s18, 4  ;;  %s3918_s20 = smov [#allocation11]   ;;  %s4065_s19 = int_to_ptr.vmem [resolvable:$true] %s473_s19 }
  0x18   : > { %p4052_p3 = pnand %p2957_p0, %p429_p2  ;;  %s511_s21 = sshll.u32 %s3918_s20, 4  ;;  %s4067_s21 = int_to_ptr.vmem [resolvable:$true] %s511_s21 }
  0x19   : > { %s3665_s23 = scalar_lea.vmem %s442_s29, 1024  ;;  %p3673_p11 = scmp.lt.s32.totalorder %s442_s29, %s442_s29 }
  0x1a   : > { %s4640_s30 = scalar_select %p4052_p3, 1, 0 }
  0x1b   : > { %p3407_p5 = pneg %p4052_p3  ;;  %p3666_p8 = scmp.ne.s32.totalorder %s442_s29, %s3665_s23 }
  0x1c   : > { %p3674_p12 = scmp.lt.s32.totalorder %s3665_s23, %s3665_s23 }
  0x1d   : > { %p4061_p6 = pnand %p3407_p5, %p4624_p1 }
  0x1e   : > { %p3675_p13 = por %p3674_p12, %p3673_p11 }
  0x1f   : > { %p4071_p7 = pneg %p4061_p6 }
  0x21   : > { %p3668_p9 = pnand %p3666_p8, %p4071_p7 }
  0x23   : > { %p3669_p10 = pneg %p3668_p9 }
  0x25   : > { %p3676_p0 = pnand %p3675_p13, %p3669_p10 }
  0x27   : > { %3679 = shalt.err (!%p3676_p0)
}
  0x28   : > { %s4618_s28 = smov 64   ;;  %s4620_s18 = smov 4  }
  0x29   : > { %s4643_s16 = sld [smem:[#allocation23_spill]]  ;;  %s3691_s15 = scalar_lea.vmem %s4065_s19, 1024 }
  0x2a   : > { %p3692_p2 = scmp.ne.s32.totalorder %s4065_s19, %s3691_s15  ;;  %p3699_p9 = scmp.lt.s32.totalorder %s4065_s19, %s4065_s19 }
  0x2b   : > { %p3700_p10 = scmp.lt.s32.totalorder %s3691_s15, %s3691_s15 }
  0x2c   : > { %p3694_p5 = pnand %p3692_p2, %p4071_p7 }
  0x2d   : > { %p3701_p11 = por %p3700_p10, %p3699_p9 }
  0x2e   : > { %p3695_p8 = pneg %p3694_p5 }
  0x2f   : > { %3410 = dma.hbm_to_vmem [thread:$0]  (!%p4061_p6), %s4643_s16, 1024, %s442_s29, [#allocation6], %s4618_s28, %s4618_s28, %s4620_s18  }
  0x30   : > { %p3702_p12 = pnand %p3701_p11, %p3695_p8 }
  0x32   : > { %3705 = shalt.err (!%p3702_p12)
}
  0x33   : > { %s4644_s5 = sld [smem:[#allocation25_spill]]  ;;  %s3717_s16 = scalar_lea.vmem %s4067_s21, 2048 }
  0x34   : > { %p3718_p13 = scmp.ne.s32.totalorder %s4067_s21, %s3717_s16  ;;  %p3725_p5 = scmp.lt.s32.totalorder %s4067_s21, %s4067_s21 }
  0x35   : > { %p3726_p8 = scmp.lt.s32.totalorder %s3717_s16, %s3717_s16 }
  0x36   : > { %p3720_p0 = pnand %p3718_p13, %p4071_p7 }
  0x37   : > { %p3727_p9 = por %p3726_p8, %p3725_p5 }
  0x38   : > { %p3721_p2 = pneg %p3720_p0 }
  0x39   : > { %3416 = dma.hbm_to_vmem [thread:$0]  (!%p4061_p6), %s4644_s5, 1024, %s4065_s19, [#allocation9], %s4618_s28, %s4618_s28, %s4620_s18  }
  0x3a   : > { %p3728_p10 = pnand %p3727_p9, %p3721_p2 }
  0x3c   : > { %3731 = shalt.err (!%p3728_p10)
}
  0x3d   : > { %s4622_s15 = smov 128   ;;  %s4623_s29 = smov 8  }
  0x3e   : > { %s4645_s11 = sld [smem:[#allocation27_spill]]  ;;  %s3923_s23 = smov [#allocation7]  }
  0x3f   : > { %s457_s17 = sshll.u32 %s3923_s23, 4  ;;  %s3924_s16 = smov [#allocation10]   ;;  %s458_s17 = int_to_ptr.vmem [resolvable:$true] %s457_s17 }
  0x40   : > { %s489_s28 = sshll.u32 %s3924_s16, 4  ;;  %s3743_s18 = scalar_lea.vmem %s458_s17, 1024  ;;  %s490_s28 = int_to_ptr.vmem [resolvable:$true] %s489_s28 }
  0x41   : > { %p3744_p11 = scmp.ne.s32.totalorder %s458_s17, %s3743_s18  ;;  %p3751_p0 = scmp.lt.s32.totalorder %s458_s17, %s458_s17 }
  0x42   : > { %p3752_p2 = scmp.lt.s32.totalorder %s3743_s18, %s3743_s18 }
  0x43   : > { %p3746_p12 = pnand %p3744_p11, %p4071_p7 }
  0x44   : > { %3422 = dma.hbm_to_vmem [thread:$0]  (!%p4061_p6), %s4645_s11, 2048, %s4067_s21, [#allocation12], %s4622_s15, %s4622_s15, %s4623_s29  }
  0x45   : > { %p3747_p13 = pneg %p3746_p12  ;;  %p3753_p5 = por %p3752_p2, %p3751_p0 }
  0x47   : > { %p3754_p8 = pnand %p3753_p5, %p3747_p13 }
  0x49   : > { %3757 = shalt.err (!%p3754_p8)
}
  0x4a   : > { %s4646_s5 = smov 4   ;;  %s4647_s19 = smov 64  }
  0x4b   : > { %s4648_s3 = sld [smem:[#allocation24_spill]]  ;;  %s3769_s23 = scalar_lea.vmem %s490_s28, 1024 }
  0x4c   : > { %p3770_p9 = scmp.ne.s32.totalorder %s490_s28, %s3769_s23  ;;  %p3777_p12 = scmp.lt.s32.totalorder %s490_s28, %s490_s28 }
  0x4d   : > { %p3778_p0 = scmp.lt.s32.totalorder %s3769_s23, %s3769_s23 }
  0x4e   : > { %p3772_p10 = pnand %p3770_p9, %p4071_p7 }
  0x4f   : > { %p3779_p13 = por %p3778_p0, %p3777_p12 }
  0x50   : > { %p3773_p11 = pneg %p3772_p10 }
  0x51   : > { %3413 = dma.hbm_to_vmem [thread:$0]  (!%p4061_p6), %s4648_s3, 1024, %s458_s17, [#allocation6], %s4647_s19, %s4647_s19, %s4646_s5  }
  0x52   : > { %p3780_p2 = pnand %p3779_p13, %p3773_p11 }
  0x54   : > { %3783 = shalt.err (!%p3780_p2)
}
  0x55   : > { %s4649_s7 = sld [smem:[#allocation26_spill]]  ;;  %s3925_s17 = smov [#allocation13]  }
  0x56   : > { %s527_s21 = sshll.u32 %s3925_s17, 4  ;;  %s528_s21 = int_to_ptr.vmem [resolvable:$true] %s527_s21 }
  0x57   : > { %s3795_s20 = scalar_lea.vmem %s528_s21, 2048  ;;  %p3803_p10 = scmp.lt.s32.totalorder %s528_s21, %s528_s21 }
  0x58   : > { %p3796_p5 = scmp.ne.s32.totalorder %s528_s21, %s3795_s20  ;;  %p3804_p11 = scmp.lt.s32.totalorder %s3795_s20, %s3795_s20 }
  0x5a   : > { %p3798_p8 = pnand %p3796_p5, %p4071_p7  ;;  %p3805_p12 = por %p3804_p11, %p3803_p10 }
  0x5b   : > { %3419 = dma.hbm_to_vmem [thread:$0]  (!%p4061_p6), %s4649_s7, 1024, %s490_s28, [#allocation9], %s4647_s19, %s4647_s19, %s4646_s5  }
  0x5c   : > { %p3799_p9 = pneg %p3798_p8 }
  0x5e   : > { %p3806_p0 = pnand %p3805_p12, %p3799_p9 }
  0x60   : > { %3809 = shalt.err (!%p3806_p0)
}
  0x61   : > { %s4650_s13 = sld [smem:[#allocation28_spill]]  ;;  %s2956_s1 = sadd.s32 4294967294, %s3914_s27  }
  0x62   : > { %s4147_s22 = sadd.s32 1, %s3914_s27   ;;  %s43_s16 = sadd.s32 1, %s3910_s26 }
  0x63   : > { %s40_s18 = ssub.s32 %s3914_s27, %s4147_s22  ;;  %p50_p13 = scmp.ne.s32.totalorder %s3910_s26, %s3906_s25 }
  0x64   : > { %p41_p7 = scmp.eq.s32.totalorder %s40_s18, 0  ;;  %p51_p2 = scmp.eq.s32.totalorder %s3914_s27, 0 }
  0x65   : > { %p56_p5 = scmp.ne.s32.totalorder %s3906_s25, %s3902_s24  ;;  %p416_p9 = scmp.eq.s32.totalorder %s4047_s0, 1 }
  0x66   : > { %s4158_s17 = scalar_select %p41_p7, %s3910_s26, %s43_s16  }
  0x67   : > { %3425 = dma.hbm_to_vmem [thread:$0]  (!%p4061_p6), %s4650_s13, 2048, %s528_s21, [#allocation12], %s4647_s19, %s4647_s19, %s4646_s5  }
  0x68   : > { %4651 = sst [smem:[#allocation21_spill]] %s4158_s17  ;;  %p4160_p8 = por %p51_p2, %p50_p13 }
  0x69   : > { %p4166_p6 = por %p4624_p1, %p56_p5  ;;  %p422_p10 = scmp.eq.s32.totalorder %s2956_s1, 1 }
  0x6a   : > { %p3440_p11 = scmp.lt.s32.totalorder %s3914_s27, 2  ;;  %s550_s19 = sand.u32 1, %s3910_s26  }
  0x6b   : > { %s4653_s5 = scalar_select %p4166_p6, 1, 0 }
  0x6c   : > { %p4173_p12 = por %p416_p9, %p50_p13  ;;  %p4177_p0 = por %p422_p10, %p56_p5 }
  0x6d   : > { %s2965_s28 = sshll.u32 %s550_s19, 5  ;;  %s3082_s18 = sshll.u32 %s3914_s27, 9 }
  0x6e   : > { %s4654_s21 = scalar_select %p4173_p12, 1, 0 }
  0x6f   : > { %s4655_s23 = scalar_select %p4177_p0, 1, 0 }
  0x70   : > { %s4656_s29 = sld [smem:[#allocation22_spill]]  ;;  %s554_s1 = scalar_lea.vmem [#allocation2], %s2965_s28 }
  0x71   : > { %s562_s7 = sshll.u32 %s554_s1, 4  ;;  %p4191_p7 = pnand %p3440_p11, %p4160_p8  ;;  %s4187_s7 = int_to_ptr.vmem [resolvable:$true] %s562_s7 }
  0x72   : > { %s4195_s13 = scalar_lea.sflag [#allocation3], %s550_s19 }
  0x73   : > { %p3812_p2 = pneg %p4191_p7 }
  0x76   : > { %s4185_s3 = scalar_lea.hbm %s4656_s29, %s3082_s18  ;;  %s3815_s28 = scalar_lea.hbm %s4656_s29, 1024 }
  0x77   : > { %s3810_s17 = scalar_lea.hbm %s4185_s3, 512  ;;  %p3816_p8 = scmp.lt.s32.totalorder %s4185_s3, %s4656_s29 }
  0x78   : > { %p3811_p13 = scmp.ne.s32.totalorder %s4185_s3, %s3810_s17  ;;  %p3817_p10 = scmp.lt.s32.totalorder %s3815_s28, %s3810_s17 }
  0x7a   : > { %p3813_p5 = pnand %p3812_p2, %p3811_p13  ;;  %p3818_p11 = por %p3817_p10, %p3816_p8 }
  0x7c   : > { %p3814_p9 = pneg %p3813_p5 }
  0x7e   : > { %p3819_p4 = pnand %p3818_p11, %p3814_p9 }
  0x80   : > { %3822 = shalt.err (!%p3819_p4)
}
  0x81   : > { %s3823_s20 = scalar_lea.vmem %s4187_s7, 512  ;;  %s3926_s19 = smov [#allocation2]  }
  0x82   : > { %p3824_p1 = scmp.ne.s32.totalorder %s4187_s7, %s3823_s20  ;;  %s3828_s26 = sshll.u32 %s3926_s19, 4  ;;  %s3829_s26 = int_to_ptr.vmem [resolvable:$false] %s3828_s26 }
  0x83   : > { %s3830_s15 = scalar_lea.vmem %s3829_s26, 1024  ;;  %p3831_p5 = scmp.lt.s32.totalorder %s4187_s7, %s3829_s26 }
  0x84   : > { %p3826_p0 = pnand %p3824_p1, %p3812_p2  ;;  %p3832_p12 = scmp.lt.s32.totalorder %s3830_s15, %s3823_s20 }
  0x86   : > { %p3827_p13 = pneg %p3826_p0  ;;  %p3833_p6 = por %p3832_p12, %p3831_p5 }
  0x88   : > { %p3834_p3 = pnand %p3833_p6, %p3827_p13 }
  0x8a   : > { %3837 = shalt.err (!%p3834_p3)
}
  0x8b   : > { %s4658_s17 = smov 8   ;;  %s4659_s18 = smov 128  }
  0x8c   : > { %3429 = dma.hbm_to_vmem [thread:$0]  (!%p4191_p7), %s4185_s3, 512, %s4187_s7, %s4195_s13, %s4659_s18, %s4659_s18, %s4658_s17  }
  0x8d   : > { %p4660_p1 = scmp.ne.s32.totalorder %s4640_s30, 0 }
  0x8e   : > { %s4222_s28 = sand.u32 (!%p4660_p1), 1, %s3906_s25   ;;  %p4661_p3 = scmp.ne.s32.totalorder (!%p4660_p1), %s4653_s5, 0 }
  0x8f   : > { %574 = sbr.rel (%p4660_p1) target bundleno = 4382 (0x111e), region = 88  ;;  %s2970_s26 = sshll.u32 (!%p4660_p1), %s4222_s28, 5 }
  0x90   : > { %s577_s16 = scalar_lea.sflag (!%p4660_p1), [#allocation3], %s4222_s28  ;;  %s4228_s11 = scalar_lea.vmem (!%p4660_p1), [#allocation2], %s2970_s26 }
  0x94   : > { %3881 = dma.done.wait (%p4661_p3), %s577_s16, 512  }
  0x95   : > { %3883 = vsyncadd (%p4661_p3), %s577_s16, 4294966784  ;;  %p4662_p4 = scmp.eq.s32.totalorder %s4047_s0, 0 }
  0x97   : > { %3885 = dma.done.wait (%p4662_p4), [#allocation6], 2048   ;;  %p4663_p6 = pmov %p4662_p4 }
  0x98   : > { %p4664_p12 = pmov %p4662_p4 }
  0x99   : > { %3887 = vsyncadd (%p4663_p6), [#allocation6], 4294965248 }
  0x9a   : > { %3889 = dma.done.wait (%p4664_p12), [#allocation9], 2048   ;;  %p4665_p0 = pmov %p4662_p4 }
  0x9c   : > { %3891 = vsyncadd (%p4665_p0), [#allocation9], 4294965248  ;;  %p4666_p7 = pmov %p4665_p0 }
  0x9d   : > { %p4667_p2 = pmov %p4665_p0 }
  0x9e   : > { %3893 = dma.done.wait (%p4666_p7), [#allocation12], 4096  }
  0x9f   : > { %3895 = vsyncadd (%p4667_p2), [#allocation12], 4294963200  ;;  %v3498_v0 = vld [vmem:[#allocation7 + $0x38] sm:$0xff]   ;;  %v3500_v2 = vld [vmem:[#allocation7 + $0x30] sm:$0xff]   ;;  %v3927_v22 = vmov 0.0   ;;  %vm3928_vm0 = vmmov 0  }
  0xa0   : > { %v3499_v1 = vld [vmem:[#allocation5 + $0x38] sm:$0xff]   ;;  %3211 = vmatprep.subr.bf16.mxu1 %v3498_v0  ;;  %v3501_v3 = vld [vmem:[#allocation5 + $0x30] sm:$0xff]   ;;  %v3502_v4 = vld [vmem:[#allocation7 + $0x28] sm:$0xff]   ;;  %vm1034_vm1 = vcmask 261120   ;;  %vm1129_vm2 = vcmask 130048   ;;  %s3929_s20 = smov 96  }
  0xa1   : > { %3191 = vmatprep.subr.bf16.mxu0 %v3499_v1  ;;  %3212 = vmatpush3.bf16.msra.mxu1 %v3498_v0  ;;  %v3503_v5 = vld [vmem:[#allocation5 + $0x28] sm:$0xff]   ;;  %v3504_v6 = vld [vmem:[#allocation7 + $0x20] sm:$0xff]   ;;  %v3506_v8 = vld [vmem:[#allocation7 + $0x18] sm:$0xff]   ;;  %s3930_s19 = smov 64   ;;  %s3931_s15 = smov 32  }
  0xa2   : > { %3192 = vmatpush3.bf16.msra.mxu0 %v3499_v1  ;;  %3213 = vmatprep.subr.bf16.mxu1 %v3500_v2  ;;  %v3505_v7 = vld [vmem:[#allocation5 + $0x20] sm:$0xff]   ;;  %v3507_v9 = vld [vmem:[#allocation5 + $0x18] sm:$0xff]   ;;  %v3508_v10 = vld [vmem:[#allocation7 + $0x10] sm:$0xff]   ;;  %s4669_s16 = sld [smem:[#allocation30_spill]]  ;;  %s3084_s3 = sshll.u32 %s4047_s0, 9 }
  0xa3   : > { %3193 = vmatprep.subr.bf16.mxu0 %v3501_v3  ;;  %v658_v11 = vld [vmem:[%s4228_s11] sm:$0xff]  ;;  %v659_v12 = vld [vmem:[%s4228_s11 + $0x8] sm:$0xff]  ;;  %v3509_v13 = vld [vmem:[#allocation5 + $0x10] sm:$0xff]   ;;  %s4670_s5 = sld [smem:[#allocation31_spill]]  ;;  %s2812_s1 = scalar_lea.sflag [#allocation4], %s4222_s28 }
  0xa4   : > { %v662_v14 = vpack.c.bf16 %v659_v12, %v658_v11  ;;  %v3510_v15 = vld [vmem:[#allocation7 + $0x8] sm:$0xff]   ;;  %v3512_v17 = vld [vmem:[#allocation7] sm:$0xff]   ;;  %v660_v19 = vld [vmem:[%s4228_s11 + $0x10] sm:$0xff]  ;;  %p4671_p8 = scmp.ne.s32.totalorder %s4654_s21, 0  ;;  %s3933_s0 = smov [#allocation14]  }
  0xa5   : > { %3214 = vmatpush3.bf16.msra.mxu1 %v3500_v2  ;;  %v3511_v16 = vld [vmem:[#allocation5 + $0x8] sm:$0xff]   ;;  %v3513_v18 = vld [vmem:[#allocation5] sm:$0xff]   ;;  %v661_v20 = vld [vmem:[%s4228_s11 + $0x18] sm:$0xff] }
  0xa6   : > { %3194 = vmatpush3.bf16.msra.mxu0 %v3501_v3  ;;  %3215 = vmatprep.subr.bf16.mxu1 %v3502_v4  ;;  %v4250_v21 = vpack.c.bf16 %v661_v20, %v660_v19  ;;  %v2987_v29 = vld [vmem:[%s4602_s4] ss:$0 sm:$0xff]  ;;  %v3514_v51 = vld [vmem:[#allocation8 + $0x38] sm:$0xff]   ;;  %v3515_v52 = vld [vmem:[#allocation8 + $0x30] sm:$0xff]  }
  0xa7   : > { %3195 = vmatprep.subr.bf16.mxu0 %v3503_v5  ;;  %3227 = vmatprep.mubr.bf16.mxu1 %v662_v14  ;;  %v2978_v30 = vld [vmem:[%s4600_s2] ss:$0 sm:$0xff]  ;;  %v3516_v53 = vld [vmem:[#allocation8 + $0x28] sm:$0xff]   ;;  %v3518_v55 = vld [vmem:[#allocation8 + $0x18] sm:$0xff]  }
  0xa8   : > { %3207 = vmatprep.mubr.bf16.mxu0 %v662_v14  ;;  %v3517_v54 = vld [vmem:[#allocation8 + $0x20] sm:$0xff]   ;;  %v3519_v56 = vld [vmem:[#allocation8 + $0x10] sm:$0xff]   ;;  %v3520_v57 = vld [vmem:[#allocation8 + $0x8] sm:$0xff]  }
  0xa9   : > { %3216 = vmatpush3.bf16.msra.mxu1 %v3502_v4  ;;  %v3521_v58 = vld [vmem:[#allocation8] sm:$0xff]  }
  0xaa   : > { %3196 = vmatpush3.bf16.msra.mxu0 %v3503_v5  ;;  %3217 = vmatprep.subr.bf16.mxu1 %v3504_v6 }
  0xab   : > { %3197 = vmatprep.subr.bf16.mxu0 %v3505_v7 }
  0xad   : > { %3218 = vmatpush3.bf16.msra.mxu1 %v3504_v6 }
  0xae   : > { %3198 = vmatpush3.bf16.msra.mxu0 %v3505_v7  ;;  %3219 = vmatprep.subr.bf16.mxu1 %v3506_v8 }
  0xaf   : > { %3199 = vmatprep.subr.bf16.mxu0 %v3507_v9 }
  0xb1   : > { %3220 = vmatpush3.bf16.msra.mxu1 %v3506_v8 }
  0xb2   : > { %3200 = vmatpush3.bf16.msra.mxu0 %v3507_v9  ;;  %3221 = vmatprep.subr.bf16.mxu1 %v3508_v10 }
  0xb3   : > { %3201 = vmatprep.subr.bf16.mxu0 %v3509_v13 }
  0xb5   : > { %3222 = vmatpush3.bf16.msra.mxu1 %v3508_v10 }
  0xb6   : > { %3202 = vmatpush3.bf16.msra.mxu0 %v3509_v13  ;;  %3223 = vmatprep.subr.bf16.mxu1 %v3510_v15 }
  0xb7   : > { %3203 = vmatprep.subr.bf16.mxu0 %v3511_v16 }
  0xb9   : > { %3224 = vmatpush3.bf16.msra.mxu1 %v3510_v15 }
  0xba   : > { %3204 = vmatpush3.bf16.msra.mxu0 %v3511_v16  ;;  %3225 = vmatprep.subr.bf16.mxu1 %v3512_v17 }
  0xbb   : > { %3205 = vmatprep.subr.bf16.mxu0 %v3513_v18 }
  0xbd   : > { %3226 = vmatpush3.bf16.msra.mxu1 %v3512_v17 }
  0xbe   : > { %3206 = vmatpush3.bf16.msra.mxu0 %v3513_v18  ;;  %3251 = vmatprep.subr.bf16.mxu1 %v3927_v22 }
  0xbf   : > { %3231 = vmatprep.subr.bf16.mxu0 %v3514_v51 }
  0xc0   : > { %3228 = vmatmul.mubr.bf16.vlgmr.msra.gmra.mxu1 %v4250_v21 }
  0xc1   : > { %3208 = vmatmul.mubr.bf16.vlgmr.msra.gmra.mxu0 %v4250_v21  ;;  %3253 = vmatprep.mubr.msk.bf16.mxu1 %vm3928_vm0, %v3927_v22 }
  0xc2   : > { %3247 = vmatprep.mubr.bf16.mxu0 %v662_v14  ;;  %3232 = vmatpush3.bf16.msra.mxu0 %v3514_v51 }
  0xc3   : > { %3233 = vmatprep.subr.bf16.mxu0 %v3515_v52 }
  0xc6   : > { %3234 = vmatpush3.bf16.msra.mxu0 %v3515_v52 }
  0xc7   : > { %3235 = vmatprep.subr.bf16.mxu0 %v3516_v53 }
  0xca   : > { %3236 = vmatpush3.bf16.msra.mxu0 %v3516_v53 }
  0xcb   : > { %3237 = vmatprep.subr.bf16.mxu0 %v3517_v54 }
  0xce   : > { %3238 = vmatpush3.bf16.msra.mxu0 %v3517_v54 }
  0xcf   : > { %3239 = vmatprep.subr.bf16.mxu0 %v3518_v55 }
  0xd2   : > { %3240 = vmatpush3.bf16.msra.mxu0 %v3518_v55 }
  0xd3   : > { %3241 = vmatprep.subr.bf16.mxu0 %v3519_v56 }
  0xd6   : > { %3242 = vmatpush3.bf16.msra.mxu0 %v3519_v56 }
  0xd7   : > { %3243 = vmatprep.subr.bf16.mxu0 %v3520_v57 }
  0xda   : > { %3244 = vmatpush3.bf16.msra.mxu0 %v3520_v57 }
  0xdb   : > { %3245 = vmatprep.subr.bf16.mxu0 %v3521_v58 }
  0xde   : > { %3246 = vmatpush3.bf16.msra.mxu0 %v3521_v58 }
  0xdf   : > { %3275 = vmatprep.subr.bf16.mxu0 %v3927_v22 }
  0xe1   : > { %3248 = vmatmul.mubr.bf16.vlgmr.msra.gmra.mxu0 %v4250_v21 }
  0xe2   : > { %3277 = vmatprep.mubr.msk.bf16.mxu0 %vm3928_vm0, %v3927_v22 }
 0x180   : > { %v3229_v23 = vpop.f32.mrf.mxu1 }
 0x181   : > { %v3209_v24 = vpop.f32.mrf.mxu0  ;;  %v898_v40 = vadd.f32 %v3229_v23, %v2987_v29 }
 0x182   : > { %v889_v25 = vpop.f32.mrf.mxu1  ;;  %v778_v44 = vadd.f32 %v3209_v24, %v2978_v30  ;;  %v2996_v24 = vld [vmem:[%s4604_s6] ss:$0 sm:$0xff] }
 0x183   : > { %v769_v26 = vpop.f32.mrf.mxu0  ;;  %v890_v32 = vadd.f32 %v2987_v29, %v889_v25 }
 0x184   : > { %v3230_v27 = vpop.f32.mrf.mxu1  ;;  %v770_v35 = vadd.f32 %v2978_v30, %v769_v26  ;;  %v1026_v48 = vmul.f32 0.17677669, %v778_v44 }
 0x185   : > { %v3210_v28 = vpop.f32.mrf.mxu0  ;;  %v901_v38 = vadd.f32 %v3230_v27, %v2987_v29 }
 0x186   : > { %v892_v31 = vpop.f32.mrf.mxu1  ;;  %v1024_v41 = vmul.f32 0.17677669, %v770_v35  ;;  %v781_v45 = vadd.f32 %v3210_v28, %v2978_v30 }
 0x187   : > { %v893_v33 = vadd.f32 %v2987_v29, %v892_v31  ;;  %v772_v34 = vpop.f32.mrf.mxu0  ;;  %v4268_v43 = vpack.c.bf16 %v901_v38, %v898_v40 }
 0x188   : > { %v773_v37 = vadd.f32 %v2978_v30, %v772_v34  ;;  %v1027_v49 = vmul.f32 0.17677669, %v781_v45 }
 0x189   : > { %v4263_v36 = vpack.c.bf16 %v893_v33, %v890_v32  ;;  %v1086_v47 = vsel %vm1034_vm1, %v4268_v43, 0 }
 0x18a   : > { %v1025_v42 = vmul.f32 0.17677669, %v773_v37  ;;  %v4279_v50 = vpack.c.bf16 %v1027_v49, %v1026_v48 }
 0x18b   : > { %v1039_v39 = vsel %vm1034_vm1, %v4263_v36, 0 }
 0x18c   : > { %3252 = vmatpush3.bf16.xpose.msra.mxu1 %v1039_v39  ;;  %v4270_v46 = vpack.c.bf16 %v1025_v42, %v1024_v41 }
 0x18d   : > { %3257 = vmatprep.subr.bf16.mxu1 %v3927_v22 }
 0x193   : > { %3254 = vmatmul.mubr.msk.bf16.vlgmr.msra.gmra.mxu1 %vm1034_vm1, %v4270_v46 }
 0x194   : > { %3258 = vmatpush3.bf16.xpose.msra.mxu1 %v1086_v47  ;;  %3259 = vmatprep.mubr.msk.bf16.mxu1 %vm3928_vm0, %v3927_v22 }
 0x195   : > { %3263 = vmatprep.subr.bf16.mxu1 %v3927_v22 }
 0x19b   : > { %3260 = vmatmul.mubr.msk.bf16.vlgmr.msra.gmra.mxu1 %vm1034_vm1, %v4279_v50 }
 0x19c   : > { %3265 = vmatprep.mubr.msk.bf16.mxu1 %vm3928_vm0, %v3927_v22 }
 0x1a1   : > { %v3249_v23 = vpop.f32.mrf.mxu0 }
 0x1a2   : > { %v1018_v25 = vadd.f32 %v3249_v23, %v2996_v24 }
 0x1a3   : > { %v1009_v26 = vpop.f32.mrf.mxu0 }
 0x1a4   : > { %v1010_v28 = vadd.f32 %v2996_v24, %v1009_v26 }
 0x1a5   : > { %v3250_v27 = vpop.f32.mrf.mxu0 }
 0x1a6   : > { %v1021_v29 = vadd.f32 %v3250_v27, %v2996_v24 }
 0x1a7   : > { %v1012_v30 = vpop.f32.mrf.mxu0 }
 0x1a8   : > { %v4301_v31 = vpack.c.bf16 %v1021_v29, %v1018_v25  ;;  %v1013_v32 = vadd.f32 %v2996_v24, %v1012_v30 }
 0x1aa   : > { %v4303_v33 = vpack.c.bf16 %v1013_v32, %v1010_v28 }
 0x1ac   : > { %3264 = vmatpush3.bf16.msra.mxu1 %v4303_v33 }
 0x1ad   : > { %3269 = vmatprep.subr.bf16.mxu1 %v3927_v22 }
 0x253   : > { %v1075_v59 = vpop.f32.mrf.mxu1 }
 0x254   : > { %v1130_v60 = vsel %vm1129_vm2, %v1075_v59, -inf }
 0x255   : > { %1131 = vmax.xlane.f32.xlu0 %v1130_v60  ;;  %v3255_v61 = vpop.f32.mrf.mxu1 }
 0x257   : > { %v1078_v62 = vpop.f32.mrf.mxu1 }
 0x258   : > { %v1133_v63 = vsel %vm1129_vm2, %v1078_v62, -inf }
 0x259   : > { %1134 = vmax.xlane.f32.xlu0 %v1133_v63  ;;  %v3256_v0 = vpop.f32.mrf.mxu1 }
 0x25b   : > { %v1122_v1 = vpop.f32.mrf.mxu1 }
 0x25c   : > { %v1136_v2 = vsel %vm1129_vm2, %v1122_v1, -inf }
 0x25d   : > { %1137 = vmax.xlane.f32.xlu1 %v1136_v2  ;;  %v3261_v3 = vpop.f32.mrf.mxu1 }
 0x25f   : > { %v1125_v4 = vpop.f32.mrf.mxu1 }
 0x260   : > { %v1139_v5 = vsel %vm1129_vm2, %v1125_v4, -inf }
 0x261   : > { %1140 = vmax.xlane.f32.xlu1 %v1139_v5  ;;  %v3262_v6 = vpop.f32.mrf.mxu1 }
 0x2de   : > { %v1132_v7 = vpop.xlane.xlu0 %1131 }
 0x2df   : > { %v1142_v8 = vsub.f32 %v1075_v59, %v1132_v7 }
 0x2e1   : > { %v1146_v9 = vmul.f32 1.442695, %v1142_v8 }
 0x2e2   : > { %v1135_v10 = vpop.xlane.xlu0 %1134 }
 0x2e3   : > { %3570 = vpow2.f32 %v1146_v9  ;;  %v1143_v11 = vsub.f32 %v1078_v62, %v1135_v10 }
 0x2e5   : > { %v1148_v12 = vmul.f32 1.442695, %v1143_v11 }
 0x2e6   : > { %v1138_v13 = vpop.xlane.xlu1 %1137 }
 0x2e7   : > { %3572 = vpow2.f32 %v1148_v12  ;;  %v1144_v14 = vsub.f32 %v1122_v1, %v1138_v13 }
 0x2e9   : > { %v1150_v15 = vmul.f32 1.442695, %v1144_v14 }
 0x2ea   : > { %v1141_v34 = vpop.xlane.xlu1 %1140 }
 0x2eb   : > { %3574 = vpow2.f32 %v1150_v15  ;;  %v1145_v35 = vsub.f32 %v1125_v4, %v1141_v34 }
 0x2ed   : > { %v1152_v37 = vmul.f32 1.442695, %v1145_v35 }
 0x2ef   : > { %3576 = vpow2.f32 %v1152_v37 }
 0x2f0   : > { %v3571_v16 = vpop.eup %3570 }
 0x2f1   : > { %v1154_v17 = vsel %vm1129_vm2, %v3571_v16, 0.0 }
 0x2f2   : > { %1155 = vadd.xlane.f32.xlu0 %v1154_v17 }
 0x2f4   : > { %v3573_v18 = vpop.eup %3572 }
 0x2f5   : > { %v1157_v19 = vsel %vm1129_vm2, %v3573_v18, 0.0 }
 0x2f6   : > { %1158 = vadd.xlane.f32.xlu1 %v1157_v19 }
 0x2f8   : > { %v3575_v20 = vpop.eup %3574 }
 0x2f9   : > { %v1160_v21 = vsel %vm1129_vm2, %v3575_v20, 0.0 }
 0x2fa   : > { %1161 = vadd.xlane.f32.xlu0 %v1160_v21 }
 0x2fc   : > { %v3577_v38 = vpop.eup %3576 }
 0x2fd   : > { %v1163_v39 = vsel %vm1129_vm2, %v3577_v38, 0.0 }
 0x307   : > { %1327 = vrot.lane.b32.xlu1 %v4268_v43, %s3929_s20 }
 0x310   : > { %1274 = vrot.lane.b32.xlu0 %v4263_v36, %s3929_s20 }
 0x32b   : > { %1164 = vadd.xlane.f32.xlu1 %v1163_v39 }
 0x33c   : > { %1271 = vrot.lane.b32.xlu1 %v4270_v46, %s3929_s20 }
 0x340   : > { %1324 = vrot.lane.b32.xlu1 %v4279_v50, %s3929_s20 }
 0x37b   : > { %v1156_v40 = vpop.xlane.xlu0 %1155 }
 0x37c   : > { %3578 = vrcp.f32 %v1156_v40 }
 0x37f   : > { %v1159_v41 = vpop.xlane.xlu1 %1158 }
 0x380   : > { %3580 = vrcp.f32 %v1159_v41 }
 0x383   : > { %v1162_v42 = vpop.xlane.xlu0 %1161  ;;  %v1328_v53 = vpop.permute.xlu1 %1327 }
 0x384   : > { %3582 = vrcp.f32 %v1162_v42  ;;  %v1333_v61 = vsel %vm1034_vm1, %v1328_v53, 0 }
 0x387   : > { %v1275_v44 = vpop.permute.xlu0 %1274 }
 0x388   : > { %v1280_v45 = vsel %vm1034_vm1, %v1275_v44, 0 }
 0x389   : > { %3276 = vmatpush3.bf16.xpose.msra.mxu0 %v1280_v45  ;;  %v3579_v47 = vpop.eup %3578 }
 0x38a   : > { %3287 = vmatprep.subr.bf16.mxu0 %v3927_v22  ;;  %v1170_v49 = vmul.f32 %v3579_v47, %v3571_v16 }
 0x38d   : > { %v3581_v48 = vpop.eup %3580 }
 0x38e   : > { %v1171_v51 = vmul.f32 %v3581_v48, %v3573_v18 }
 0x390   : > { %v1174_v52 = vpack.c.bf16 %v1171_v51, %v1170_v49 }
 0x391   : > { %v3583_v56 = vpop.eup %3582 }
 0x392   : > { %3266 = vmatmul.mubr.msk.bf16.vlgmr.msra.gmra.mxu1 %vm1129_vm2, %v1174_v52  ;;  %v1172_v58 = vmul.f32 %v3583_v56, %v3575_v20 }
 0x393   : > { %3270 = vmatpush3.bf16.msra.mxu1 %v4301_v31  ;;  %3271 = vmatprep.mubr.msk.bf16.mxu1 %vm3928_vm0, %v3927_v22 }
 0x394   : > { %3281 = vmatprep.subr.bf16.mxu1 %v3927_v22 }
 0x3b4   : > { %v1165_v54 = vpop.xlane.xlu1 %1164 }
 0x3b5   : > { %3584 = vrcp.f32 %v1165_v54 }
 0x3b8   : > { %v1272_v55 = vpop.permute.xlu1 %1271 }
 0x3b9   : > { %3278 = vmatmul.mubr.msk.bf16.vlgmr.msra.gmra.mxu0 %vm1034_vm1, %v1272_v55 }
 0x3ba   : > { %3289 = vmatprep.mubr.msk.bf16.mxu0 %vm3928_vm0, %v3927_v22 }
 0x3bc   : > { %v1325_v62 = vpop.permute.xlu1 %1324 }
 0x3c2   : > { %v3585_v57 = vpop.eup %3584 }
 0x3c3   : > { %v1173_v59 = vmul.f32 %v3585_v57, %v3577_v38 }
 0x3c5   : > { %v1175_v60 = vpack.c.bf16 %v1173_v59, %v1172_v58  ;;  %v3522_v58 = vld [vmem:[#allocation10 + $0x8] sm:$0xff]  }
 0x3c7   : > { %3272 = vmatmul.mubr.msk.bf16.vlgmr.msra.gmra.mxu1 %vm1129_vm2, %v1175_v60 }
 0x3c8   : > { %3282 = vmatpush3.bf16.xpose.msra.mxu1 %v1333_v61  ;;  %3283 = vmatprep.mubr.msk.bf16.mxu1 %vm3928_vm0, %v3927_v22 }
 0x3c9   : > { %3293 = vmatprep.subr.bf16.mxu1 %v3927_v22 }
 0x3cf   : > { %3284 = vmatmul.mubr.msk.bf16.vlgmr.msra.gmra.mxu1 %vm1034_vm1, %v1325_v62 }
 0x3d0   : > { %3295 = vmatprep.mubr.msk.bf16.mxu1 %vm3928_vm0, %v3927_v22 }
 0x452   : > { %v4332_v63 = vpop.f32.mrf.mxu1 }
 0x454   : > { %v3267_v0 = vpop.f32.mrf.mxu1 }
 0x456   : > { %v4334_v1 = vpop.f32.mrf.mxu1 }
 0x457   : > { %v1264_v2 = vpack.c.bf16 %v4334_v1, %v4332_v63  ;;  %v3524_v1 = vld [vmem:[#allocation10 + $0x18] sm:$0xff]  }
 0x458   : > { %v3268_v3 = vpop.f32.mrf.mxu1 }
 0x479   : > { %v1316_v4 = vpop.f32.mrf.mxu0 }
 0x47a   : > { %v1376_v5 = vsel %vm1129_vm2, %v1316_v4, -inf }
 0x47b   : > { %1377 = vmax.xlane.f32.xlu0 %v1376_v5  ;;  %v3279_v6 = vpop.f32.mrf.mxu0 }
 0x47d   : > { %v1319_v7 = vpop.f32.mrf.mxu0 }
 0x47e   : > { %v1379_v8 = vsel %vm1129_vm2, %v1319_v7, -inf }
 0x47f   : > { %1380 = vmax.xlane.f32.xlu1 %v1379_v8  ;;  %v3280_v9 = vpop.f32.mrf.mxu0 }
 0x487   : > { %v4340_v10 = vpop.f32.mrf.mxu1 }
 0x489   : > { %v3273_v11 = vpop.f32.mrf.mxu1 }
 0x48b   : > { %v4342_v12 = vpop.f32.mrf.mxu1 }
 0x48c   : > { %v1265_v13 = vpack.c.bf16 %v4342_v12, %v4340_v10 }
 0x48d   : > { %v3274_v14 = vpop.f32.mrf.mxu1 }
 0x48f   : > { %v1369_v15 = vpop.f32.mrf.mxu1 }
 0x490   : > { %v1382_v16 = vsel %vm1129_vm2, %v1369_v15, -inf }
 0x491   : > { %1383 = vmax.xlane.f32.xlu0 %v1382_v16  ;;  %v3285_v17 = vpop.f32.mrf.mxu1 }
 0x493   : > { %v1372_v18 = vpop.f32.mrf.mxu1 }
 0x494   : > { %v1385_v19 = vsel %vm1129_vm2, %v1372_v18, -inf }
 0x495   : > { %1386 = vmax.xlane.f32.xlu0 %v1385_v19  ;;  %v3286_v20 = vpop.f32.mrf.mxu1 }
 0x504   : > { %v1378_v21 = vpop.xlane.xlu0 %1377 }
 0x505   : > { %v1388_v23 = vsub.f32 %v1316_v4, %v1378_v21  ;;  %v3523_v4 = vld [vmem:[#allocation10] sm:$0xff]  }
 0x507   : > { %v1392_v24 = vmul.f32 1.442695, %v1388_v23 }
 0x508   : > { %v1381_v25 = vpop.xlane.xlu1 %1380 }
 0x509   : > { %3586 = vpow2.f32 %v1392_v24  ;;  %v1389_v26 = vsub.f32 %v1319_v7, %v1381_v25 }
 0x50b   : > { %v1394_v27 = vmul.f32 1.442695, %v1389_v26 }
 0x50d   : > { %3588 = vpow2.f32 %v1394_v27 }
 0x516   : > { %v3587_v28 = vpop.eup %3586 }
 0x517   : > { %v1400_v29 = vsel %vm1129_vm2, %v3587_v28, 0.0 }
 0x518   : > { %1401 = vadd.xlane.f32.xlu0 %v1400_v29 }
 0x51a   : > { %v3589_v30 = vpop.eup %3588  ;;  %v1384_v32 = vpop.xlane.xlu0 %1383 }
 0x51b   : > { %v1390_v34 = vsub.f32 %v1369_v15, %v1384_v32  ;;  %v1403_v35 = vsel %vm1129_vm2, %v3589_v30, 0.0 }
 0x51c   : > { %1404 = vadd.xlane.f32.xlu1 %v1403_v35 }
 0x51d   : > { %v1396_v37 = vmul.f32 1.442695, %v1390_v34 }
 0x51e   : > { %v1387_v38 = vpop.xlane.xlu0 %1386 }
 0x51f   : > { %3590 = vpow2.f32 %v1396_v37  ;;  %v1391_v39 = vsub.f32 %v1372_v18, %v1387_v38 }
 0x521   : > { %v1398_v40 = vmul.f32 1.442695, %v1391_v39 }
 0x523   : > { %3592 = vpow2.f32 %v1398_v40 }
 0x52c   : > { %v3591_v41 = vpop.eup %3590 }
 0x52d   : > { %v1406_v42 = vsel %vm1129_vm2, %v3591_v41, 0.0 }
 0x52e   : > { %1407 = vadd.xlane.f32.xlu0 %v1406_v42 }
 0x530   : > { %v3593_v44 = vpop.eup %3592 }
 0x531   : > { %v1409_v45 = vsel %vm1129_vm2, %v3593_v44, 0.0 }
 0x532   : > { %1410 = vadd.xlane.f32.xlu1 %v1409_v45 }
 0x543   : > { %1471 = vrot.lane.b32.xlu1 %v4301_v31, %s3929_s20 }
 0x544   : > { %1423 = vrot.lane.b32.xlu0 %v4303_v33, %s3929_s20 }
 0x547   : > { %1660 = vrot.lane.b32.xlu1 %v4263_v36, %s3930_s19 }
 0x548   : > { %1658 = vrot.lane.b32.xlu0 %v4270_v46, %s3930_s19 }
 0x54b   : > { %1711 = vrot.lane.b32.xlu1 %v4268_v43, %s3930_s19 }
 0x54f   : > { %1709 = vrot.lane.b32.xlu1 %v4279_v50, %s3930_s19 }
 0x5a1   : > { %v1402_v48 = vpop.xlane.xlu0 %1401 }
 0x5a5   : > { %v1405_v47 = vpop.xlane.xlu1 %1404 }
 0x5a6   : > { %3594 = vrcp.f32 %v1405_v47 }
 0x5a7   : > { %3596 = vrcp.f32 %v1402_v48 }
 0x5b3   : > { %v3595_v49 = vpop.eup %3594 }
 0x5b4   : > { %v3597_v52 = vpop.eup %3596  ;;  %v1417_v53 = vmul.f32 %v3595_v49, %v3589_v30 }
 0x5b5   : > { %v1416_v56 = vmul.f32 %v3597_v52, %v3587_v28 }
 0x5b7   : > { %v1408_v51 = vpop.xlane.xlu0 %1407  ;;  %v1420_v57 = vpack.c.bf16 %v1417_v53, %v1416_v56 }
 0x5b8   : > { %3598 = vrcp.f32 %v1408_v51 }
 0x5bb   : > { %v1411_v54 = vpop.xlane.xlu1 %1410  ;;  %v1424_v55 = vpop.permute.xlu0 %1423 }
 0x5bc   : > { %3600 = vrcp.f32 %v1411_v54  ;;  %3288 = vmatpush3.bf16.msra.mxu0 %v1424_v55 }
 0x5bd   : > { %3299 = vmatprep.subr.bf16.mxu0 %v3524_v1 }
 0x5bf   : > { %v1472_v59 = vpop.permute.xlu1 %1471  ;;  %3290 = vmatmul.mubr.msk.bf16.vlgmr.msra.gmra.mxu0 %vm1129_vm2, %v1420_v57  ;;  %v1659_v23 = vpop.permute.xlu0 %1658 }
 0x5c0   : > { %3294 = vmatpush3.bf16.msra.mxu1 %v1472_v59  ;;  %3300 = vmatpush3.bf16.msra.mxu0 %v3524_v1 }
 0x5c1   : > { %3307 = vmatprep.subr.bf16.mxu1 %v3522_v58 }
 0x5c3   : > { %v1661_v5 = vpop.permute.xlu1 %1660 }
 0x5c4   : > { %v1666_v18 = vsel %vm1034_vm1, %v1661_v5, 0 }
 0x5c5   : > { %v3599_v60 = vpop.eup %3598 }
 0x5c6   : > { %v1418_v62 = vmul.f32 %v3599_v60, %v3591_v41 }
 0x5c7   : > { %v1712_v6 = vpop.permute.xlu1 %1711 }
 0x5c8   : > { %v1717_v7 = vsel %vm1034_vm1, %v1712_v6, 0 }
 0x5c9   : > { %v3601_v61 = vpop.eup %3600 }
 0x5ca   : > { %v1419_v0 = vmul.f32 %v3601_v61, %v3593_v44 }
 0x5cb   : > { %v1710_v63 = vpop.permute.xlu1 %1709 }
 0x5cc   : > { %v1421_v3 = vpack.c.bf16 %v1419_v0, %v1418_v62 }
 0x5ce   : > { %3296 = vmatmul.mubr.msk.bf16.vlgmr.msra.gmra.mxu1 %vm1129_vm2, %v1421_v3 }
 0x5cf   : > { %3308 = vmatpush3.bf16.msra.mxu1 %v3522_v58  ;;  %3311 = vmatprep.mubr.msk.bf16.mxu1 %vm1034_vm1, %v1264_v2  ;;  %v3525_v2 = vld [vmem:[#allocation10 + $0x10] sm:$0xff]  }
 0x5d0   : > { %3309 = vmatprep.subr.bf16.mxu1 %v3523_v4  ;;  %3301 = vmatprep.subr.bf16.mxu0 %v3525_v2 }
 0x5d1   : > { %3302 = vmatpush3.bf16.msra.mxu0 %v3525_v2 }
 0x5d2   : > { %3315 = vmatprep.subr.bf16.mxu0 %v3927_v22 }
 0x5d3   : > { %3310 = vmatpush3.bf16.msra.mxu1 %v3523_v4 }
 0x5d4   : > { %3321 = vmatprep.subr.bf16.mxu1 %v3927_v22 }
 0x5d6   : > { %3312 = vmatmul.mubr.msk.bf16.vlgmr.msra.gmra.mxu1 %vm1034_vm1, %v1265_v13 }
 0x5d7   : > { %3322 = vmatpush3.bf16.xpose.msra.mxu1 %v1717_v7  ;;  %3323 = vmatprep.mubr.msk.bf16.mxu1 %vm3928_vm0, %v3927_v22 }
 0x5d8   : > { %3333 = vmatprep.subr.bf16.mxu1 %v3927_v22 }
 0x5de   : > { %3324 = vmatmul.mubr.msk.bf16.vlgmr.msra.gmra.mxu1 %vm1034_vm1, %v1710_v63 }
 0x5df   : > { %3335 = vmatprep.mubr.msk.bf16.mxu1 %vm3928_vm0, %v3927_v22 }
 0x67f   : > { %v1463_v8 = vpop.f32.mrf.mxu0 }
 0x681   : > { %v3291_v9 = vpop.f32.mrf.mxu0 }
 0x683   : > { %v1466_v10 = vpop.f32.mrf.mxu0 }
 0x684   : > { %v1518_v11 = vpack.c.bf16 %v1466_v10, %v1463_v8 }
 0x685   : > { %v3292_v12 = vpop.f32.mrf.mxu0 }
 0x686   : > { %3303 = vmatprep.mubr.msk.bf16.mxu0 %vm1034_vm1, %v1518_v11 }
 0x68e   : > { %v1511_v13 = vpop.f32.mrf.mxu1 }
 0x690   : > { %v3297_v14 = vpop.f32.mrf.mxu1 }
 0x692   : > { %v1514_v15 = vpop.f32.mrf.mxu1 }
 0x693   : > { %v1519_v16 = vpack.c.bf16 %v1514_v15, %v1511_v13 }
 0x694   : > { %v3298_v17 = vpop.f32.mrf.mxu1 }
 0x695   : > { %3304 = vmatmul.mubr.msk.bf16.vlgmr.msra.gmra.mxu0 %vm1034_vm1, %v1519_v16 }
 0x696   : > { %3316 = vmatpush3.bf16.xpose.msra.mxu0 %v1666_v18  ;;  %v4386_v19 = vpop.f32.mrf.mxu1  ;;  %3317 = vmatprep.mubr.msk.bf16.mxu0 %vm3928_vm0, %v3927_v22  ;;  %v3526_v18 = vld [vmem:[#allocation10 + $0x28] sm:$0xff]  }
 0x697   : > { %3327 = vmatprep.subr.bf16.mxu0 %v3927_v22 }
 0x698   : > { %v4391_v20 = vpop.f32.mrf.mxu1 }
 0x69a   : > { %v4393_v21 = vpop.f32.mrf.mxu1 }
 0x69c   : > { %v4395_v24 = vpop.f32.mrf.mxu1 }
 0x69d   : > { %3318 = vmatmul.mubr.msk.bf16.vlgmr.msra.gmra.mxu0 %vm1034_vm1, %v1659_v23  ;;  %v3527_v23 = vld [vmem:[#allocation10 + $0x20] sm:$0xff]  }
 0x69e   : > { %v1753_v25 = vpop.f32.mrf.mxu1  ;;  %3329 = vmatprep.mubr.msk.bf16.mxu0 %vm3928_vm0, %v3927_v22 }
 0x69f   : > { %v1766_v41 = vsel %vm1129_vm2, %v1753_v25, -inf }
 0x6a0   : > { %v3325_v26 = vpop.f32.mrf.mxu1 }
 0x6a2   : > { %v1756_v27 = vpop.f32.mrf.mxu1 }
 0x6a3   : > { %v1769_v44 = vsel %vm1129_vm2, %v1756_v27, -inf }
 0x6a4   : > { %v3326_v28 = vpop.f32.mrf.mxu1 }
 0x755   : > { %v4400_v29 = vpop.f32.mrf.mxu0 }
 0x757   : > { %v4402_v30 = vpop.f32.mrf.mxu0 }
 0x759   : > { %v4404_v32 = vpop.f32.mrf.mxu0 }
 0x75b   : > { %v4406_v34 = vpop.f32.mrf.mxu0 }
 0x75d   : > { %v1702_v35 = vpop.f32.mrf.mxu0 }
 0x75e   : > { %v1760_v37 = vsel %vm1129_vm2, %v1702_v35, -inf }
 0x75f   : > { %1761 = vmax.xlane.f32.xlu0 %v1760_v37  ;;  %v3319_v38 = vpop.f32.mrf.mxu0 }
 0x761   : > { %v1705_v39 = vpop.f32.mrf.mxu0 }
 0x762   : > { %v1763_v40 = vsel %vm1129_vm2, %v1705_v39, -inf }
 0x763   : > { %1764 = vmax.xlane.f32.xlu1 %v1763_v40  ;;  %v3320_v42 = vpop.f32.mrf.mxu0  ;;  %1767 = vmax.xlane.f32.xlu0 %v1766_v41 }
 0x767   : > { %1770 = vmax.xlane.f32.xlu0 %v1769_v44 }
 0x7e8   : > { %v1762_v45 = vpop.xlane.xlu0 %1761 }
 0x7e9   : > { %v1772_v47 = vsub.f32 %v1702_v35, %v1762_v45 }
 0x7eb   : > { %v1776_v54 = vmul.f32 1.442695, %v1772_v47 }
 0x7ec   : > { %v1765_v48 = vpop.xlane.xlu1 %1764  ;;  %v1768_v49 = vpop.xlane.xlu0 %1767 }
 0x7ed   : > { %v1774_v51 = vsub.f32 %v1753_v25, %v1768_v49  ;;  %v1773_v52 = vsub.f32 %v1705_v39, %v1765_v48 }
 0x7ef   : > { %v1780_v53 = vmul.f32 1.442695, %v1774_v51  ;;  %v1778_v57 = vmul.f32 1.442695, %v1773_v52 }
 0x7f0   : > { %v1771_v55 = vpop.xlane.xlu0 %1770 }
 0x7f1   : > { %v1775_v56 = vsub.f32 %v1756_v27, %v1771_v55  ;;  %3602 = vpow2.f32 %v1780_v53 }
 0x7f2   : > { %3604 = vpow2.f32 %v1776_v54 }
 0x7f3   : > { %v1782_v58 = vmul.f32 1.442695, %v1775_v56 }
 0x7f5   : > { %3606 = vpow2.f32 %v1782_v58 }
 0x7f6   : > { %3608 = vpow2.f32 %v1778_v57 }
 0x7fe   : > { %v3603_v59 = vpop.eup %3602 }
 0x7ff   : > { %v1790_v60 = vsel %vm1129_vm2, %v3603_v59, 0.0  ;;  %v3605_v61 = vpop.eup %3604 }
 0x800   : > { %1791 = vadd.xlane.f32.xlu0 %v1790_v60  ;;  %v1784_v4 = vsel %vm1129_vm2, %v3605_v61, 0.0 }
 0x802   : > { %v3607_v62 = vpop.eup %3606 }
 0x803   : > { %v1793_v0 = vsel %vm1129_vm2, %v3607_v62, 0.0  ;;  %v3609_v3 = vpop.eup %3608 }
 0x804   : > { %1794 = vadd.xlane.f32.xlu1 %v1793_v0  ;;  %1785 = vadd.xlane.f32.xlu0 %v1784_v4  ;;  %v1787_v5 = vsel %vm1129_vm2, %v3609_v3, 0.0 }
 0x808   : > { %1788 = vadd.xlane.f32.xlu1 %v1787_v5  ;;  %v1655_v5 = vadd.f32 %v4393_v21, %v4404_v32 }
 0x819   : > { %1853 = vrot.lane.b32.xlu1 %v4301_v31, %s3930_s19 }
 0x81a   : > { %1806 = vrot.lane.b32.xlu0 %v4303_v33, %s3930_s19  ;;  %s3842_s19 = sshll.u32 %s3933_s0, 4  ;;  %s3843_s19 = int_to_ptr.vmem [resolvable:$false] %s3842_s19 }
 0x81d   : > { %1979 = vrot.lane.b32.xlu1 %v4263_v36, %s3931_s15 }
 0x81e   : > { %1977 = vrot.lane.b32.xlu0 %v4270_v46, %s3931_s15 }
 0x821   : > { %2030 = vrot.lane.b32.xlu1 %v4268_v43, %s3931_s15 }
 0x825   : > { %2028 = vrot.lane.b32.xlu1 %v4279_v50, %s3931_s15 }
 0x889   : > { %v1792_v6 = vpop.xlane.xlu0 %1791 }
 0x88a   : > { %3610 = vrcp.f32 %v1792_v6 }
 0x88d   : > { %v1795_v7 = vpop.xlane.xlu1 %1794  ;;  %v1786_v63 = vpop.xlane.xlu0 %1785 }
 0x88e   : > { %3612 = vrcp.f32 %v1795_v7 }
 0x88f   : > { %3614 = vrcp.f32 %v1786_v63  ;;  %v1647_v63 = vadd.f32 %v4395_v24, %v4406_v34 }
 0x891   : > { %v1789_v1 = vpop.xlane.xlu1 %1788  ;;  %v1807_v2 = vpop.permute.xlu0 %1806 }
 0x892   : > { %3616 = vrcp.f32 %v1789_v1  ;;  %3328 = vmatpush3.bf16.msra.mxu0 %v1807_v2 }
 0x893   : > { %3339 = vmatprep.subr.bf16.mxu0 %v3526_v18 }
 0x895   : > { %v1854_v36 = vpop.permute.xlu1 %1853  ;;  %v1978_v17 = vpop.permute.xlu0 %1977 }
 0x896   : > { %3334 = vmatpush3.bf16.msra.mxu1 %v1854_v36 }
 0x897   : > { %3347 = vmatprep.subr.bf16.mxu1 %v3927_v22  ;;  %v3611_v46 = vpop.eup %3610 }
 0x898   : > { %v1802_v43 = vmul.f32 %v3611_v46, %v3603_v59 }
 0x899   : > { %v1980_v50 = vpop.permute.xlu1 %1979 }
 0x89a   : > { %v1985_v13 = vsel %vm1034_vm1, %v1980_v50, 0 }
 0x89b   : > { %v3613_v8 = vpop.eup %3612 }
 0x89c   : > { %v1803_v9 = vmul.f32 %v3613_v8, %v3607_v62  ;;  %v3615_v10 = vpop.eup %3614  ;;  %v1652_v62 = vadd.f32 %v4386_v19, %v4400_v29 }
 0x89d   : > { %v1800_v14 = vmul.f32 %v3615_v10, %v3605_v61  ;;  %v2031_v40 = vpop.permute.xlu1 %2030 }
 0x89e   : > { %v1805_v11 = vpack.c.bf16 %v1803_v9, %v1802_v43  ;;  %v2036_v48 = vsel %vm1034_vm1, %v2031_v40, 0 }
 0x89f   : > { %v3617_v12 = vpop.eup %3616 }
 0x8a0   : > { %3336 = vmatmul.mubr.msk.bf16.vlgmr.msra.gmra.mxu1 %vm1129_vm2, %v1805_v11  ;;  %v1801_v15 = vmul.f32 %v3617_v12, %v3609_v3  ;;  %v1644_v3 = vadd.f32 %v4391_v20, %v4402_v30 }
 0x8a1   : > { %3348 = vmatpush3.bf16.xpose.msra.mxu1 %v1985_v13  ;;  %3349 = vmatprep.mubr.msk.bf16.mxu1 %vm3928_vm0, %v3927_v22  ;;  %v2029_v53 = vpop.permute.xlu1 %2028 }
 0x8a2   : > { %v1804_v16 = vpack.c.bf16 %v1801_v15, %v1800_v14  ;;  %3359 = vmatprep.subr.bf16.mxu1 %v3927_v22 }
 0x8a4   : > { %3330 = vmatmul.mubr.msk.bf16.vlgmr.msra.gmra.mxu0 %vm1129_vm2, %v1804_v16 }
 0x8a5   : > { %3340 = vmatpush3.bf16.msra.mxu0 %v3526_v18 }
 0x8a6   : > { %3341 = vmatprep.subr.bf16.mxu0 %v3527_v23 }
 0x8a8   : > { %3350 = vmatmul.mubr.msk.bf16.vlgmr.msra.gmra.mxu1 %vm1034_vm1, %v1978_v17 }
 0x8a9   : > { %3361 = vmatprep.mubr.msk.bf16.mxu1 %vm3928_vm0, %v3927_v22  ;;  %3342 = vmatpush3.bf16.msra.mxu0 %v3527_v23 }
 0x8aa   : > { %3353 = vmatprep.subr.bf16.mxu0 %v3927_v22 }
 0x960   : > { %v1893_v25 = vpop.f32.mrf.mxu1 }
 0x962   : > { %v3337_v26 = vpop.f32.mrf.mxu1 }
 0x964   : > { %v1846_v27 = vpop.f32.mrf.mxu0  ;;  %v1896_v28 = vpop.f32.mrf.mxu1 }
 0x965   : > { %v1901_v44 = vpack.c.bf16 %v1896_v28, %v1893_v25 }
 0x966   : > { %v3331_v35 = vpop.f32.mrf.mxu0  ;;  %v3338_v37 = vpop.f32.mrf.mxu1 }
 0x968   : > { %v1849_v38 = vpop.f32.mrf.mxu0  ;;  %v2021_v39 = vpop.f32.mrf.mxu1 }
 0x969   : > { %v1900_v41 = vpack.c.bf16 %v1849_v38, %v1846_v27  ;;  %v2079_v42 = vsel %vm1129_vm2, %v2021_v39, -inf }
 0x96a   : > { %v3332_v45 = vpop.f32.mrf.mxu0  ;;  %2080 = vmax.xlane.f32.xlu0 %v2079_v42  ;;  %v3351_v47 = vpop.f32.mrf.mxu1  ;;  %v3529_v42 = vld [vmem:[#allocation10 + $0x30] sm:$0xff]  }
 0x96b   : > { %3343 = vmatprep.mubr.msk.bf16.mxu0 %vm1034_vm1, %v1900_v41  ;;  %v3528_v41 = vld [vmem:[#allocation10 + $0x38] sm:$0xff]  }
 0x96c   : > { %3344 = vmatmul.mubr.msk.bf16.vlgmr.msra.gmra.mxu0 %vm1034_vm1, %v1901_v44  ;;  %v2024_v49 = vpop.f32.mrf.mxu1 }
 0x96d   : > { %3354 = vmatpush3.bf16.xpose.msra.mxu0 %v2036_v48  ;;  %v2082_v51 = vsel %vm1129_vm2, %v2024_v49, -inf  ;;  %3355 = vmatprep.mubr.msk.bf16.mxu0 %vm3928_vm0, %v3927_v22 }
 0x96e   : > { %2083 = vmax.xlane.f32.xlu1 %v2082_v51  ;;  %v3352_v52 = vpop.f32.mrf.mxu1  ;;  %3365 = vmatprep.subr.bf16.mxu0 %v3927_v22 }
 0x974   : > { %3356 = vmatmul.mubr.msk.bf16.vlgmr.msra.gmra.mxu0 %vm1034_vm1, %v2029_v53 }
 0x975   : > { %3367 = vmatprep.mubr.msk.bf16.mxu0 %vm3928_vm0, %v3927_v22 }
 0x9f3   : > { %v2081_v59 = vpop.xlane.xlu0 %2080 }
 0x9f4   : > { %v2091_v60 = vsub.f32 %v2021_v39, %v2081_v59  ;;  %v3037_v59 = vld [vmem:[%s4606_s8] ss:$0 sm:$0xff] }
 0x9f6   : > { %v2095_v61 = vmul.f32 1.442695, %v2091_v60 }
 0x9f7   : > { %v2084_v54 = vpop.xlane.xlu1 %2083 }
 0x9f8   : > { %v2092_v55 = vsub.f32 %v2024_v49, %v2084_v54 }
 0x9fa   : > { %v2097_v56 = vmul.f32 1.442695, %v2092_v55 }
 0x9fc   : > { %3618 = vpow2.f32 %v2097_v56 }
 0x9fd   : > { %3620 = vpow2.f32 %v2095_v61 }
 0xa09   : > { %v3619_v57 = vpop.eup %3618 }
 0xa0a   : > { %v2106_v58 = vsel %vm1129_vm2, %v3619_v57, 0.0  ;;  %v3621_v21 = vpop.eup %3620 }
 0xa0b   : > { %2107 = vadd.xlane.f32.xlu1 %v2106_v58  ;;  %v2103_v8 = vsel %vm1129_vm2, %v3621_v21, 0.0 }
 0xa2c   : > { %v3345_v0 = vpop.f32.mrf.mxu0 }
 0xa2d   : > { %v4455_v22 = vadd.f32 %v3345_v0, %v1652_v62 }
 0xa2e   : > { %v1958_v4 = vpop.f32.mrf.mxu0 }
 0xa2f   : > { %v4459_v6 = vadd.f32 %v1958_v4, %v1644_v3 }
 0xa30   : > { %v3346_v7 = vpop.f32.mrf.mxu0 }
 0xa31   : > { %v4463_v1 = vadd.f32 %v3346_v7, %v1655_v5  ;;  %v3650_v7 = vld [vmem:[%s4228_s11] sm:$0xff] }
 0xa32   : > { %v1961_v19 = vpop.f32.mrf.mxu0 }
 0xa33   : > { %v4465_v29 = vadd.f32 %v1961_v19, %v1647_v63 }
 0xa34   : > { %v2072_v2 = vpop.f32.mrf.mxu0 }
 0xa35   : > { %v2085_v20 = vsel %vm1129_vm2, %v2072_v2, -inf }
 0xa36   : > { %v3357_v30 = vpop.f32.mrf.mxu0  ;;  %2086 = vmax.xlane.f32.xlu0 %v2085_v20 }
 0xa37   : > { %v3652_v30 = vld [vmem:[%s4228_s11 + $0x18] sm:$0xff] }
 0xa38   : > { %v2075_v36 = vpop.f32.mrf.mxu0 }
 0xa39   : > { %v2088_v46 = vsel %vm1129_vm2, %v2075_v36, -inf }
 0xa3a   : > { %v3358_v32 = vpop.f32.mrf.mxu0  ;;  %2089 = vmax.xlane.f32.xlu0 %v2088_v46  ;;  %v3653_v46 = vld [vmem:[%s4228_s11 + $0x10] sm:$0xff] }
 0xa3b   : > { %v3532_v32 = vld [vmem:[#allocation11 + $0x74] ss:$8 sps:$4 sm:$0xff]  }
 0xa3e   : > { %2104 = vadd.xlane.f32.xlu0 %v2103_v8 }
 0xa94   : > { %v2108_v16 = vpop.xlane.xlu1 %2107 }
 0xabf   : > { %v2087_v24 = vpop.xlane.xlu0 %2086 }
 0xac0   : > { %v2093_v34 = vsub.f32 %v2072_v2, %v2087_v24  ;;  %v3651_v2 = vld [vmem:[%s4228_s11 + $0x8] sm:$0xff]  ;;  %s654_s11 = scalar_lea.vmem [#allocation14], %s2970_s26  ;;  %s4553_s26 = scalar_lea.hbm %s4670_s5, %s3084_s3 }
 0xac1   : > { %s2826_s7 = sshll.u32 %s654_s11, 4  ;;  %s4555_s7 = int_to_ptr.vmem [resolvable:$true] %s2826_s7 }
 0xac2   : > { %v2099_v43 = vmul.f32 1.442695, %v2093_v34  ;;  %s3838_s20 = scalar_lea.vmem %s4555_s7, 512  ;;  %p3845_p13 = scmp.lt.s32.totalorder %s4555_s7, %s3843_s19 }
 0xac3   : > { %v2090_v9 = vpop.xlane.xlu0 %2089  ;;  %p3839_p9 = scmp.ne.s32.totalorder %s4555_s7, %s3838_s20 }
 0xac4   : > { %3622 = vpow2.f32 %v2099_v43  ;;  %v2094_v10 = vsub.f32 %v2075_v36, %v2090_v9 }
 0xac5   : > { %p3840_p10 = pnand %p3839_p9, %p4671_p8 }
 0xac6   : > { %v2101_v50 = vmul.f32 1.442695, %v2094_v10 }
 0xac7   : > { %v2105_v15 = vpop.xlane.xlu0 %2104  ;;  %p3841_p11 = pneg %p3840_p10 }
 0xac8   : > { %3624 = vpow2.f32 %v2101_v50 }
 0xac9   : > { %3626 = vrcp.f32 %v2105_v15 }
 0xaca   : > { %3628 = vrcp.f32 %v2108_v16 }
 0xad1   : > { %v3623_v11 = vpop.eup %3622 }
 0xad2   : > { %v2109_v12 = vsel %vm1129_vm2, %v3623_v11, 0.0 }
 0xad3   : > { %2110 = vadd.xlane.f32.xlu0 %v2109_v12 }
 0xad5   : > { %v3625_v13 = vpop.eup %3624 }
 0xad6   : > { %v2112_v14 = vsel %vm1129_vm2, %v3625_v13, 0.0  ;;  %v3627_v17 = vpop.eup %3626 }
 0xad7   : > { %2113 = vadd.xlane.f32.xlu1 %v2112_v14  ;;  %v3629_v23 = vpop.eup %3628  ;;  %v2119_v25 = vmul.f32 %v3627_v17, %v3621_v21  ;;  %v3530_v21 = vld [vmem:[#allocation11 + $0x70] ss:$8 sps:$4 sm:$0xff]  }
 0xad8   : > { %v2120_v28 = vmul.f32 %v3629_v23, %v3619_v57  ;;  %v3533_v23 = vld [vmem:[#allocation11 + $0x60] ss:$8 sps:$4 sm:$0xff]  }
 0xada   : > { %v2123_v35 = vpack.c.bf16 %v2120_v28, %v2119_v25  ;;  %v3538_v25 = vld [vmem:[#allocation11 + $0x54] ss:$8 sps:$4 sm:$0xff]   ;;  %v3539_v28 = vld [vmem:[#allocation11 + $0x40] ss:$8 sps:$4 sm:$0xff]  }
 0xae8   : > { %2172 = vrot.lane.b32.xlu1 %v4301_v31, %s3931_s15 }
 0xae9   : > { %2125 = vrot.lane.b32.xlu0 %v4303_v33, %s3931_s15  ;;  %s4668_s15 = sld [smem:[#allocation29_spill]] }
 0xb5c   : > { %v2111_v18 = vpop.xlane.xlu0 %2110 }
 0xb5d   : > { %3630 = vrcp.f32 %v2111_v18  ;;  %v3535_v18 = vld [vmem:[#allocation11 + $0x64] ss:$8 sps:$4 sm:$0xff]  }
 0xb60   : > { %v2126_v26 = vpop.permute.xlu0 %2125  ;;  %v2114_v27 = vpop.xlane.xlu1 %2113 }
 0xb61   : > { %3632 = vrcp.f32 %v2114_v27  ;;  %3360 = vmatpush3.bf16.msra.mxu1 %v2126_v26  ;;  %v3536_v26 = vld [vmem:[#allocation11 + $0x50] ss:$8 sps:$4 sm:$0xff]   ;;  %v3541_v27 = vld [vmem:[#allocation11 + $0x44] ss:$8 sps:$4 sm:$0xff]  }
 0xb62   : > { %3371 = vmatprep.subr.bf16.mxu1 %v3528_v41 }
 0xb64   : > { %3362 = vmatmul.mubr.msk.bf16.vlgmr.msra.gmra.mxu1 %vm1129_vm2, %v2123_v35  ;;  %v2173_v31 = vpop.permute.xlu1 %2172  ;;  %v3542_v35 = vld [vmem:[#allocation11 + $0x30] ss:$8 sps:$4 sm:$0xff]  }
 0xb65   : > { %3366 = vmatpush3.bf16.msra.mxu0 %v2173_v31  ;;  %3372 = vmatpush3.bf16.msra.mxu1 %v3528_v41  ;;  %v3544_v31 = vld [vmem:[#allocation11 + $0x34] ss:$8 sps:$4 sm:$0xff]   ;;  %v3553_v41 = vld [vmem:[#allocation11 + $0x4] ss:$8 sps:$4 sm:$0xff]  }
 0xb66   : > { %3373 = vmatprep.subr.bf16.mxu1 %v3529_v42  ;;  %2488 = vmatprep.subr.bf16.mxu0 %v3532_v32 }
 0xb69   : > { %3374 = vmatpush3.bf16.msra.mxu1 %v3529_v42  ;;  %v3551_v42 = vld [vmem:[#allocation11] ss:$8 sps:$4 sm:$0xff]  }
 0xb6a   : > { %v3631_v33 = vpop.eup %3630 }
 0xb6b   : > { %v2121_v38 = vmul.f32 %v3631_v33, %v3623_v11  ;;  %v3547_v33 = vld [vmem:[#allocation11 + $0x24] ss:$8 sps:$4 sm:$0xff]  }
 0xb6e   : > { %v3633_v37 = vpop.eup %3632 }
 0xb6f   : > { %v2122_v39 = vmul.f32 %v3633_v37, %v3625_v13  ;;  %v3545_v37 = vld [vmem:[#allocation11 + $0x20] ss:$8 sps:$4 sm:$0xff]  }
 0xb71   : > { %v2124_v40 = vpack.c.bf16 %v2122_v39, %v2121_v38  ;;  %v3932_v38 = vmov 0   ;;  %v3550_v39 = vld [vmem:[#allocation11 + $0x14] ss:$8 sps:$4 sm:$0xff]  }
 0xb73   : > { %3368 = vmatmul.mubr.msk.bf16.vlgmr.msra.gmra.mxu0 %vm1129_vm2, %v2124_v40  ;;  %v3548_v40 = vld [vmem:[#allocation11 + $0x10] ss:$8 sps:$4 sm:$0xff]  }
 0xb74   : > { %2489 = vmatpush1.bf16.msra.mxu0 %v3530_v21  ;;  %2520 = vmatprep.mubr.bf16.mxu0 %v3932_v38 }
 0xb75   : > { %2490 = vmatprep.subr.bf16.mxu0 %v3535_v18 }
 0xb78   : > { %2491 = vmatpush1.bf16.msra.mxu0 %v3533_v23 }
 0xb79   : > { %2492 = vmatprep.subr.bf16.mxu0 %v3538_v25 }
 0xb7c   : > { %2493 = vmatpush1.bf16.msra.mxu0 %v3536_v26  ;;  %v2396_v26 = vld [vmem:[%s4610_s12] sm:$0x3] }
 0xb7d   : > { %2494 = vmatprep.subr.bf16.mxu0 %v3541_v27 }
 0xb80   : > { %2495 = vmatpush1.bf16.msra.mxu0 %v3539_v28 }
 0xb81   : > { %2496 = vmatprep.subr.bf16.mxu0 %v3544_v31 }
 0xb84   : > { %2497 = vmatpush1.bf16.msra.mxu0 %v3542_v35 }
 0xb85   : > { %2498 = vmatprep.subr.bf16.mxu0 %v3547_v33 }
 0xb88   : > { %2499 = vmatpush1.bf16.msra.mxu0 %v3545_v37 }
 0xb89   : > { %2500 = vmatprep.subr.bf16.mxu0 %v3550_v39 }
 0xb8c   : > { %2501 = vmatpush1.bf16.msra.mxu0 %v3548_v40 }
 0xb8d   : > { %2502 = vmatprep.subr.bf16.mxu0 %v3553_v41 }
 0xb90   : > { %2503 = vmatpush1.bf16.msra.mxu0 %v3551_v42 }
 0xc24   : > { %v2165_v44 = vpop.f32.mrf.mxu1 }
 0xc26   : > { %v3363_v45 = vpop.f32.mrf.mxu1 }
 0xc27   : > { %v3555_v45 = vld [vmem:[#allocation13 + $0x38] sm:$0xff]  }
 0xc28   : > { %v2168_v47 = vpop.f32.mrf.mxu1 }
 0xc29   : > { %v2219_v48 = vpack.c.bf16 %v2168_v47, %v2165_v44  ;;  %v3554_v44 = vld [vmem:[#allocation13 + $0x78] sm:$0xff]   ;;  %v3556_v47 = vld [vmem:[#allocation13 + $0x70] sm:$0xff]  }
 0xc2a   : > { %v3364_v49 = vpop.f32.mrf.mxu1  ;;  %3163 = vmatprep.subr.bf16.mxu1 %v3554_v44 }
 0xc2b   : > { %3375 = vmatprep.mubr.msk.bf16.mxu1 %vm1034_vm1, %v2219_v48  ;;  %v3557_v48 = vld [vmem:[#allocation13 + $0x30] sm:$0xff]   ;;  %v3558_v49 = vld [vmem:[#allocation13 + $0x68] sm:$0xff]  }
 0xc33   : > { %v2212_v51 = vpop.f32.mrf.mxu0 }
 0xc35   : > { %v3369_v52 = vpop.f32.mrf.mxu0 }
 0xc36   : > { %v3560_v52 = vld [vmem:[#allocation13 + $0x60] sm:$0xff]  }
 0xc37   : > { %v2215_v53 = vpop.f32.mrf.mxu0 }
 0xc38   : > { %v2220_v54 = vpack.c.bf16 %v2215_v53, %v2212_v51  ;;  %v3559_v51 = vld [vmem:[#allocation13 + $0x28] sm:$0xff]   ;;  %v3561_v53 = vld [vmem:[#allocation13 + $0x20] sm:$0xff]  }
 0xc39   : > { %v3370_v55 = vpop.f32.mrf.mxu0 }
 0xc3a   : > { %3376 = vmatmul.mubr.msk.bf16.vlgmr.msra.gmra.mxu1 %vm1034_vm1, %v2220_v54  ;;  %v3562_v54 = vld [vmem:[#allocation13 + $0x58] sm:$0xff]  }
 0xc3b   : > { %3164 = vmatpush3.bf16.msra.mxu1 %v3555_v45  ;;  %v3563_v55 = vld [vmem:[#allocation13 + $0x18] sm:$0xff]  }
 0xc3c   : > { %3165 = vmatprep.subr.bf16.mxu1 %v3556_v47 }
 0xc3f   : > { %3166 = vmatpush3.bf16.msra.mxu1 %v3557_v48 }
 0xc40   : > { %3167 = vmatprep.subr.bf16.mxu1 %v3558_v49 }
 0xc43   : > { %3168 = vmatpush3.bf16.msra.mxu1 %v3559_v51 }
 0xc44   : > { %3169 = vmatprep.subr.bf16.mxu1 %v3560_v52 }
 0xc47   : > { %3170 = vmatpush3.bf16.msra.mxu1 %v3561_v53 }
 0xc48   : > { %3171 = vmatprep.subr.bf16.mxu1 %v3562_v54 }
 0xc4b   : > { %3172 = vmatpush3.bf16.msra.mxu1 %v3563_v55 }
 0xcfa   : > { %v3377_v56 = vpop.f32.mrf.mxu1 }
 0xcfb   : > { %v2294_v3 = vadd.f32 %v3377_v56, %v4455_v22 }
 0xcfc   : > { %v2277_v57 = vpop.f32.mrf.mxu1 }
 0xcfd   : > { %v2292_v58 = vadd.f32 %v2277_v57, %v4459_v6  ;;  %v2305_v6 = vadd.f32 %v3037_v59, %v2294_v3 }
 0xcfe   : > { %v3378_v60 = vpop.f32.mrf.mxu1 }
 0xcff   : > { %v2303_v61 = vadd.f32 %v3037_v59, %v2292_v58  ;;  %v2295_v62 = vadd.f32 %v3378_v60, %v4463_v1  ;;  %v2309_v1 = vadd.f32 %v3653_v46, %v2305_v6  ;;  %v3038_v6 = vld [vmem:[%s4607_s9] ss:$0 sm:$0xff] }
 0xd00   : > { %v2280_v0 = vpop.f32.mrf.mxu1 }
 0xd01   : > { %v2306_v4 = vadd.f32 %v3037_v59, %v2295_v62  ;;  %v2293_v5 = vadd.f32 %v2280_v0, %v4465_v29  ;;  %v2307_v63 = vadd.f32 %v3650_v7, %v2303_v61 }
 0xd03   : > { %v2304_v19 = vadd.f32 %v3037_v59, %v2293_v5  ;;  %2313 = vadd.xlane.f32.xlu1 %v2307_v63  ;;  %v2310_v36 = vadd.f32 %v3652_v30, %v2306_v4 }
 0xd05   : > { %v2308_v20 = vadd.f32 %v3651_v2, %v2304_v19 }
 0xd07   : > { %2315 = vadd.xlane.f32.xlu0 %v2308_v20  ;;  %2319 = vadd.xlane.f32.xlu1 %v2310_v36 }
 0xd0b   : > { %2317 = vadd.xlane.f32.xlu0 %v2309_v1 }
 0xd8c   : > { %v2314_v22 = vpop.xlane.xlu1 %2313 }
 0xd8d   : > { %v2322_v29 = vmul.f32 0.0078125, %v2314_v22 }
 0xd8f   : > { %v4491_v8 = vsub.f32 %v2307_v63, %v2322_v29 }
 0xd90   : > { %v2316_v24 = vpop.xlane.xlu0 %2315  ;;  %v2320_v34 = vpop.xlane.xlu1 %2319 }
 0xd91   : > { %v2323_v43 = vmul.f32 0.0078125, %v2316_v24  ;;  %v2325_v9 = vmul.f32 0.0078125, %v2320_v34  ;;  %v2330_v10 = vmul.f32 %v4491_v8, %v4491_v8 }
 0xd93   : > { %v4495_v50 = vsub.f32 %v2308_v20, %v2323_v43  ;;  %2334 = vadd.xlane.f32.xlu0 %v2330_v10  ;;  %v4497_v12 = vsub.f32 %v2310_v36, %v2325_v9  ;;  %v3039_v36 = vld [vmem:[%s4608_s10] ss:$0 sm:$0xff] }
 0xd94   : > { %v2318_v11 = vpop.xlane.xlu0 %2317 }
 0xd95   : > { %v2324_v13 = vmul.f32 0.0078125, %v2318_v11  ;;  %v2331_v14 = vmul.f32 %v4495_v50, %v4495_v50  ;;  %v2333_v17 = vmul.f32 %v4497_v12, %v4497_v12  ;;  %v3564_v11 = vld [vmem:[#allocation13 + $0x50] sm:$0xff]  }
 0xd96   : > { %3173 = vmatprep.subr.bf16.mxu1 %v3564_v11 }
 0xd97   : > { %v4501_v15 = vsub.f32 %v2309_v1, %v2324_v13  ;;  %2336 = vadd.xlane.f32.xlu1 %v2331_v14  ;;  %v3565_v13 = vld [vmem:[#allocation13 + $0x10] sm:$0xff]   ;;  %v3567_v14 = vld [vmem:[#allocation13 + $0x8] sm:$0xff]  }
 0xd98   : > { %3174 = vmatpush3.bf16.msra.mxu1 %v3565_v13 }
 0xd99   : > { %v2332_v16 = vmul.f32 %v4501_v15, %v4501_v15 }
 0xd9b   : > { %2338 = vadd.xlane.f32.xlu0 %v2332_v16  ;;  %2340 = vadd.xlane.f32.xlu1 %v2333_v17  ;;  %v3569_v16 = vld [vmem:[#allocation13] sm:$0xff]   ;;  %v2398_v17 = vlaneseq }
 0xd9d   : > { %v2399_v18 = vshrl.u32 %v2398_v17, 7 }
 0xd9f   : > { %v2404_v23 = vsub.s32 1, %v2399_v18  ;;  %v2400_v25 = vsub.s32 0, %v2399_v18 }
 0xda1   : > { %v2405_v28 = vrot.slane %v2396_v26, %v2404_v23  ;;  %v2401_v35 = vrot.slane %v2396_v26, %v2400_v25 }
 0xe1c   : > { %v2335_v56 = vpop.xlane.xlu0 %2334 }
 0xe1d   : > { %v2342_v57 = vmul.f32 0.0078125, %v2335_v56 }
 0xe1f   : > { %v2346_v58 = vadd.f32 1e-05, %v2342_v57 }
 0xe20   : > { %v2337_v59 = vpop.xlane.xlu1 %2336 }
 0xe21   : > { %3634 = vrsqrt.f32 %v2346_v58  ;;  %v2343_v60 = vmul.f32 0.0078125, %v2337_v59 }
 0xe23   : > { %v2347_v61 = vadd.f32 1e-05, %v2343_v60 }
 0xe24   : > { %v2339_v62 = vpop.xlane.xlu0 %2338  ;;  %v2341_v0 = vpop.xlane.xlu1 %2340 }
 0xe25   : > { %3636 = vrsqrt.f32 %v2347_v61  ;;  %v2344_v3 = vmul.f32 0.0078125, %v2339_v62  ;;  %v2345_v4 = vmul.f32 0.0078125, %v2341_v0 }
 0xe27   : > { %v2348_v5 = vadd.f32 1e-05, %v2344_v3  ;;  %v2349_v7 = vadd.f32 1e-05, %v2345_v4 }
 0xe29   : > { %3638 = vrsqrt.f32 %v2348_v5  ;;  %v3056_v5 = vld [vmem:[%s4612_s14] ss:$0 sm:$0xff] }
 0xe2a   : > { %3640 = vrsqrt.f32 %v2349_v7 }
 0xe2e   : > { %v3635_v63 = vpop.eup %3634 }
 0xe2f   : > { %v2354_v19 = vmul.f32 %v3635_v63, %v4491_v8 }
 0xe31   : > { %v2364_v30 = vmul.f32 %v3038_v6, %v2354_v19 }
 0xe32   : > { %v3637_v2 = vpop.eup %3636 }
 0xe33   : > { %v2355_v20 = vmul.f32 %v3637_v2, %v4495_v50  ;;  %v4516_v32 = vadd.f32 %v3039_v36, %v2364_v30 }
 0xe35   : > { %v2365_v46 = vmul.f32 %v3038_v6, %v2355_v20 }
 0xe36   : > { %v3639_v1 = vpop.eup %3638 }
 0xe37   : > { %v3641_v21 = vpop.eup %3640  ;;  %v4518_v22 = vadd.f32 %v3039_v36, %v2365_v46  ;;  %v2356_v29 = vmul.f32 %v3639_v1, %v4501_v15  ;;  %v3568_v15 = vld [vmem:[#allocation13 + $0x40] sm:$0xff]  }
 0xe38   : > { %v2357_v8 = vmul.f32 %v3641_v21, %v4497_v12  ;;  %v3566_v12 = vld [vmem:[#allocation13 + $0x48] sm:$0xff]  }
 0xe39   : > { %v2378_v24 = vpack.c.bf16 %v4518_v22, %v4516_v32  ;;  %v2366_v34 = vmul.f32 %v3038_v6, %v2356_v29  ;;  %3175 = vmatprep.subr.bf16.mxu1 %v3566_v12 }
 0xe3a   : > { %v2367_v43 = vmul.f32 %v3038_v6, %v2357_v8  ;;  %3176 = vmatpush3.bf16.msra.mxu1 %v3567_v14 }
 0xe3b   : > { %2521 = vmatmul.mubr.bf16.vlgmr.msra.gmra.mxu0 %v2378_v24  ;;  %v4525_v9 = vadd.f32 %v3039_v36, %v2366_v34  ;;  %3177 = vmatprep.subr.bf16.mxu1 %v3568_v15 }
 0xe3c   : > { %2530 = vmatprep.mubr.bf16.mxu0 %v3932_v38  ;;  %v4527_v10 = vadd.f32 %v3039_v36, %v2367_v43 }
 0xe3e   : > { %v2379_v50 = vpack.c.bf16 %v4527_v10, %v4525_v9  ;;  %3178 = vmatpush3.bf16.msra.mxu1 %v3569_v16 }
 0xe43   : > { %2531 = vmatmul.mubr.bf16.gmra.mxu0 %v2379_v50 }
 0xefb   : > { %v2522_v27 = vpop.f32.mrf.mxu0 }
 0xefc   : > { %v2523_v39 = vadd.f32 %v2522_v27, %v2401_v35 }
 0xefd   : > { %v2524_v31 = vpop.f32.mrf.mxu0 }
 0xefe   : > { %v2525_v37 = vadd.f32 %v2524_v31, %v2405_v28  ;;  %v2541_v48 = vmax.f32 %v2523_v39, 0.0 }
 0xeff   : > { %v2526_v33 = vpop.f32.mrf.mxu0 }
 0xf00   : > { %v2527_v38 = vadd.f32 %v2526_v33, %v2401_v35  ;;  %v2542_v45 = vmax.f32 %v2525_v37, 0.0 }
 0xf01   : > { %v2528_v40 = vpop.f32.mrf.mxu0 }
 0xf02   : > { %v2529_v41 = vadd.f32 %v2528_v40, %v2405_v28  ;;  %v2543_v42 = vmax.f32 %v2527_v38, 0.0 }
 0xf03   : > { %v2532_v44 = vpop.f32.mrf.mxu0 }
 0xf04   : > { %v2544_v47 = vmax.f32 %v2529_v41, 0.0  ;;  %v2549_v52 = vpack.c.bf16 %v2543_v42, %v2541_v48  ;;  %v2533_v56 = vadd.f32 %v2532_v44, %v2401_v35 }
 0xf05   : > { %v2534_v49 = vpop.f32.mrf.mxu0 }
 0xf06   : > { %v2550_v51 = vpack.c.bf16 %v2544_v47, %v2542_v45  ;;  %v2535_v54 = vadd.f32 %v2534_v49, %v2405_v28  ;;  %v2545_v62 = vmax.f32 %v2533_v56, 0.0 }
 0xf07   : > { %v2536_v53 = vpop.f32.mrf.mxu0 }
 0xf08   : > { %v2537_v55 = vadd.f32 %v2536_v53, %v2401_v35  ;;  %2720 = vmatprep.mubr.bf16.mxu1 %v2550_v51  ;;  %v2546_v60 = vmax.f32 %v2535_v54, 0.0  ;;  %v3073_v51 = vld [vmem:[%s4668_s15] ss:$0 sm:$0xff]  ;;  %s3844_s15 = scalar_lea.vmem %s3843_s19, 1024 }
 0xf09   : > { %v2538_v57 = vpop.f32.mrf.mxu0  ;;  %2721 = vmatmul.mubr.bf16.vlgmr.msra.gmra.mxu1 %v2549_v52  ;;  %v3074_v53 = vld [vmem:[%s4669_s16] ss:$0 sm:$0xff]  ;;  %p3846_p5 = scmp.lt.s32.totalorder %s3844_s15, %s3838_s20 }
 0xf0a   : > { %v2539_v58 = vadd.f32 %v2538_v57, %v2405_v28  ;;  %v2547_v59 = vmax.f32 %v2537_v55, 0.0 }
 0xf0b   : > { %p3847_p1 = por %p3846_p5, %p3845_p13 }
 0xf0c   : > { %v2548_v61 = vmax.f32 %v2539_v58, 0.0  ;;  %v2551_v3 = vpack.c.bf16 %v2547_v59, %v2545_v62 }
 0xf0d   : > { %p3848_p3 = pnand %p3847_p1, %p3841_p11 }
 0xf0e   : > { %v2552_v0 = vpack.c.bf16 %v2548_v61, %v2546_v60 }
 0xf10   : > { %2728 = vmatprep.mubr.bf16.mxu1 %v2552_v0 }
 0xf11   : > { %2729 = vmatmul.mubr.bf16.gmra.mxu1 %v2551_v3 }
 0xfc9   : > { %v3179_v4 = vpop.f32.mrf.mxu1 }
 0xfcb   : > { %v3180_v7 = vpop.f32.mrf.mxu1 }
 0xfcc   : > { %v3181_v63 = vadd.f32 %v3180_v7, %v3179_v4 }
 0xfcd   : > { %v3182_v19 = vpop.f32.mrf.mxu1 }
 0xfce   : > { %v2723_v6 = vadd.f32 %v3181_v63, %v3056_v5 }
 0xfcf   : > { %v3183_v2 = vpop.f32.mrf.mxu1 }
 0xfd0   : > { %v3184_v20 = vadd.f32 %v3183_v2, %v3182_v19  ;;  %v2737_v30 = vadd.f32 %v2723_v6, %v4516_v32 }
 0xfd1   : > { %v3185_v36 = vpop.f32.mrf.mxu1 }
 0xfd2   : > { %v2726_v46 = vadd.f32 %v3184_v20, %v3056_v5  ;;  %2743 = vadd.xlane.f32.xlu0 %v2737_v30 }
 0xfd3   : > { %v3186_v1 = vpop.f32.mrf.mxu1 }
 0xfd4   : > { %v3187_v21 = vadd.f32 %v3186_v1, %v3185_v36  ;;  %v2738_v29 = vadd.f32 %v2726_v46, %v4518_v22 }
 0xfd5   : > { %v3188_v8 = vpop.f32.mrf.mxu1 }
 0xfd6   : > { %v2731_v24 = vadd.f32 %v3187_v21, %v3056_v5  ;;  %2745 = vadd.xlane.f32.xlu1 %v2738_v29 }
 0xfd7   : > { %v3189_v34 = vpop.f32.mrf.mxu1 }
 0xfd8   : > { %v3190_v43 = vadd.f32 %v3189_v34, %v3188_v8  ;;  %v2739_v50 = vadd.f32 %v2731_v24, %v4525_v9 }
 0xfda   : > { %v2734_v11 = vadd.f32 %v3190_v43, %v3056_v5  ;;  %2747 = vadd.xlane.f32.xlu0 %v2739_v50 }
 0xfdc   : > { %v2740_v13 = vadd.f32 %v2734_v11, %v4527_v10 }
 0xfde   : > { %2749 = vadd.xlane.f32.xlu1 %v2740_v13 }
0x105b   : > { %v2744_v32 = vpop.xlane.xlu0 %2743 }
0x105c   : > { %v2751_v12 = vmul.f32 0.0078125, %v2744_v32 }
0x105e   : > { %v2755_v14 = vsub.f32 %v2737_v30, %v2751_v12 }
0x105f   : > { %v2746_v15 = vpop.xlane.xlu1 %2745 }
0x1060   : > { %v2752_v16 = vmul.f32 0.0078125, %v2746_v15  ;;  %v2759_v17 = vmul.f32 %v2755_v14, %v2755_v14 }
0x1062   : > { %v2756_v18 = vsub.f32 %v2738_v29, %v2752_v16  ;;  %2763 = vadd.xlane.f32.xlu0 %v2759_v17 }
0x1063   : > { %v2748_v22 = vpop.xlane.xlu0 %2747 }
0x1064   : > { %v2753_v23 = vmul.f32 0.0078125, %v2748_v22  ;;  %v2760_v25 = vmul.f32 %v2756_v18, %v2756_v18 }
0x1066   : > { %v2757_v26 = vsub.f32 %v2739_v50, %v2753_v23  ;;  %2765 = vadd.xlane.f32.xlu1 %v2760_v25 }
0x1067   : > { %v2750_v27 = vpop.xlane.xlu1 %2749 }
0x1068   : > { %v2754_v9 = vmul.f32 0.0078125, %v2750_v27  ;;  %v2761_v28 = vmul.f32 %v2757_v26, %v2757_v26 }
0x106a   : > { %v2758_v35 = vsub.f32 %v2740_v13, %v2754_v9  ;;  %2767 = vadd.xlane.f32.xlu0 %v2761_v28 }
0x106c   : > { %v2762_v10 = vmul.f32 %v2758_v35, %v2758_v35 }
0x106e   : > { %2769 = vadd.xlane.f32.xlu1 %v2762_v10 }
0x10eb   : > { %v2764_v31 = vpop.xlane.xlu0 %2763 }
0x10ec   : > { %v2771_v33 = vmul.f32 0.0078125, %v2764_v31 }
0x10ee   : > { %v2775_v37 = vadd.f32 1e-05, %v2771_v33 }
0x10ef   : > { %v2766_v38 = vpop.xlane.xlu1 %2765 }
0x10f0   : > { %3642 = vrsqrt.f32 %v2775_v37  ;;  %v2772_v39 = vmul.f32 0.0078125, %v2766_v38 }
0x10f2   : > { %v2776_v40 = vadd.f32 1e-05, %v2772_v39 }
0x10f3   : > { %v2768_v41 = vpop.xlane.xlu0 %2767 }
0x10f4   : > { %3644 = vrsqrt.f32 %v2776_v40  ;;  %v2773_v42 = vmul.f32 0.0078125, %v2768_v41 }
0x10f6   : > { %v2777_v44 = vadd.f32 1e-05, %v2773_v42 }
0x10f7   : > { %v2770_v45 = vpop.xlane.xlu1 %2769 }
0x10f8   : > { %3646 = vrsqrt.f32 %v2777_v44  ;;  %v2774_v47 = vmul.f32 0.0078125, %v2770_v45 }
0x10fa   : > { %v2778_v48 = vadd.f32 1e-05, %v2774_v47 }
0x10fc   : > { %3648 = vrsqrt.f32 %v2778_v48 }
0x10fd   : > { %v3643_v49 = vpop.eup %3642 }
0x10fe   : > { %v2783_v52 = vmul.f32 %v3643_v49, %v2755_v14 }
0x1100   : > { %v2793_v54 = vmul.f32 %v3073_v51, %v2783_v52 }
0x1101   : > { %v3645_v55 = vpop.eup %3644 }
0x1102   : > { %v2803_v56 = vadd.f32 %v3074_v53, %v2793_v54  ;;  %v2784_v57 = vmul.f32 %v3645_v55, %v2756_v18 }
0x1104   : > { %2807 = vst [vmem:[%s654_s11] sm:$0xff] %v2803_v56  ;;  %v2794_v58 = vmul.f32 %v3073_v51, %v2784_v57 }
0x1105   : > { %v3647_v59 = vpop.eup %3646 }
0x1106   : > { %v2804_v60 = vadd.f32 %v3074_v53, %v2794_v58  ;;  %v2785_v61 = vmul.f32 %v3647_v59, %v2757_v26 }
0x1108   : > { %2808 = vst [vmem:[%s654_s11 + $0x8] sm:$0xff] %v2804_v60  ;;  %v2795_v62 = vmul.f32 %v3073_v51, %v2785_v61 }
0x1109   : > { %v3649_v0 = vpop.eup %3648 }
0x110a   : > { %v2805_v3 = vadd.f32 %v3074_v53, %v2795_v62  ;;  %v2786_v4 = vmul.f32 %v3649_v0, %v2758_v35 }
0x110c   : > { %2809 = vst [vmem:[%s654_s11 + $0x10] sm:$0xff] %v2805_v3  ;;  %v2796_v5 = vmul.f32 %v3073_v51, %v2786_v4 }
0x110e   : > { %v2806_v7 = vadd.f32 %v3074_v53, %v2796_v5 }
0x1110   : > { %2810 = vst [vmem:[%s654_s11 + $0x18] sm:$0xff] %v2806_v7 }
0x1111   : > { %3851 = shalt.err (!%p3848_p3)
}
0x1112   : > { %s3852_s17 = scalar_lea.hbm %s4553_s26, 512  ;;  %s3856_s11 = scalar_lea.hbm %s4670_s5, 1024 }
0x1113   : > { %p3853_p4 = scmp.ne.s32.totalorder %s4553_s26, %s3852_s17  ;;  %p3857_p0 = scmp.lt.s32.totalorder %s4553_s26, %s4670_s5 }
0x1114   : > { %p3858_p7 = scmp.lt.s32.totalorder %s3856_s11, %s3852_s17 }
0x1115   : > { %p3854_p6 = pnand %p3853_p4, %p4671_p8 }
0x1116   : > { %p3859_p2 = por %p3858_p7, %p3857_p0 }
0x1117   : > { %p3855_p12 = pneg %p3854_p6 }
0x1119   : > { %p3860_p9 = pnand %p3859_p2, %p3855_p12 }
0x111b   : > { %3863 = shalt.err (!%p3860_p9)
}
0x111c   : > { %s3934_s30 = smov 128   ;;  %s3935_s20 = smov 8  }
0x111d   : > { %3405 = dma.vmem_to_hbm [thread:$0]  (%p4671_p8), %s4555_s7, 512, %s4553_s26, %s2812_s1, %s3934_s30, %s3934_s30, %s3935_s20  }
0x111e PF: > { %s2841_s0 = sand.u32 1, %s3902_s24   ;;  %p4672_p10 = scmp.ne.s32.totalorder %s4655_s23, 0 }
0x111f   : > { %p4673_p11 = scmp.ge.s32.totalorder %s3914_s27, 2  ;;  %s2842_s19 = scalar_lea.sflag [#allocation4], %s2841_s0 }
0x1121   : > { %p3431_p13 = pnand %p4673_p11, %p4672_p10 }
0x1123   : > { %p3432_p5 = pneg %p3431_p13 }
0x1125   : > { %3897 = dma.done.wait (%p3432_p5), %s2842_s19, 512  }
0x1126   : > { %3899 = vsyncadd (%p3432_p5), %s2842_s19, 4294966784  ;;  %s4674_s15 = sld [smem:[#allocation20_spill]]  ;;  %p33_p1 = scmp.ge.s32.totalorder %s4147_s22, 4  }
0x1127   : > { %s4675_s26 = sld [smem:[#allocation21_spill]]  ;;  %s4676_s24 = smov %s3906_s25 }
0x1128   : > { %s4678_s27 = smov %s4147_s22  ;;  %35 = sbr.rel (!%p33_p1) target bundleno = 19 (0x13), region = 157 }
0x112c   : > { %s4677_s25 = smov %s4674_s15 }
0x112d   :  { %2847 = vsyncpa [#allocation3], 1 }
0x112e   :  { %2849 = vsyncpa [#allocation3 + $0x1], 1 }
0x112f   :  { %2850 = vsyncpa [#allocation6], 1 }
0x1130   :  { %2851 = vsyncpa [#allocation9], 1 }
0x1131   :  { %2852 = vsyncpa [#allocation12], 1 }
0x1132   :  { %2853 = vsyncpa [#allocation4], 1 }
0x1133   :  { %2855 = vsyncpa [#allocation4 + $0x1], 1 }

</bundles_post_ra>
